<compile_context>
chip_gen: v7x
topology: tpu7x:2x2x1
jax: 0.10.0
libtpu: 0.0.40
codegen_flags: <defaults>
</compile_context>

<pallas_src>
import functools

import jax
import jax.numpy as jnp
from jax import lax
from jax.experimental import pallas as pl
from jax.experimental.pallas import tpu as pltpu


def cbam_kernel(x_ref, w1t_ref, w2t_ref, b2_ref, wm_ref, scal_ref, out_ref,
                pf_ref, *, H, W, K, hid):
    pad = (K - 1) // 2
    HW = H * W
    PADF = pad * (W + 1)                      # flat zero-pad, covers row & col reach
    BB, C, _ = x_ref.shape

    x = x_ref[...]                            # (BB, C, HW) lane-dense

    # ---------------- Channel gate (VPU only, no MXU) ----------------
    avg = jnp.mean(x, axis=2)                 # (BB, C)  lane reduce
    mx = jnp.max(x, axis=2)                   # (BB, C)
    w1t = w1t_ref[...]                        # (hid, C)
    w2t = w2t_ref[...]                        # (hid, C)
    att = 2.0 * b2_ref[...]                   # (1, C); b2 added once per pooling path
    for pool in (avg, mx):                    # avg-pool path, max-pool path
        for j in range(hid):                  # hid is tiny (C // 16)
            hj = jnp.sum(pool * w1t[j:j + 1, :], axis=1, keepdims=True) + scal_ref[j]
            hj = jnp.maximum(hj, 0.0)         # (BB, 1)   ReLU
            att = att + hj * w2t[j:j + 1, :]  # (BB, C)
    # exact sigmoid (pl.reciprocal(approx=True) would also work; kept exact
    # so the result matches the pure-JAX reference at 1e-4).
    scale_c = 1.0 / (1.0 + jnp.exp(-att))     # (BB, C)
    x_cg = x * scale_c[:, :, None]            # (BB, C, HW)

    # ---------------- ChannelPool (max / mean over C) ----------------
    cmax = jnp.max(x_cg, axis=1)              # (BB, HW)  sublane reduce
    cmean = jnp.mean(x_cg, axis=1)            # (BB, HW)
    comp = jnp.concatenate([cmax, cmean], axis=0)      # (2*BB, HW)

    # Flat zero-padded compress maps -> VMEM scratch (tap windows become vld's).
    zpad = jnp.zeros((2 * BB, PADF), jnp.float32)
    pf_ref[...] = jnp.concatenate([zpad, comp, zpad], axis=1)   # (2*BB, HW+2*PADF)

    # ---------------- 7x7 spatial conv in flat layout ----------------
    # acc[r, h*W+w] += w_c(r)[dh,dw] * comp_c(r)[h+dh-pad, w+dw-pad]
    # Row-boundary bleed of the flat shift is zeroed by the column-validity
    # mask folded into wm_ref (precomputed in the wrapper).
    acc = jnp.zeros((2 * BB, HW), jnp.float32)
    for dh in range(K):
        for dw in range(K):
            t = dh * K + dw
            s = dh * W + dw
            band = pf_ref[:, s:s + HW]        # (2*BB, HW) static-offset VMEM load
            acc = acc + wm_ref[t] * band      # single lane-dense FMA per tap
    conv = acc[:BB] + acc[BB:] + scal_ref[hid]          # (BB, HW), BN-folded bias
    scale_sp = 1.0 / (1.0 + jnp.exp(-conv))             # (BB, HW)

    out_ref[...] = (x_cg * scale_sp[:, None, :]).astype(out_ref.dtype)


def _device_info():
    try:
        kind = jax.devices()[0].device_kind.lower()
    except Exception:
        kind = ""
    two_tc = "v7" in kind                     # v7x: 2 TensorCores per chip
    vmem_cap = (48 if two_tc else 100) * 1024 * 1024
    return two_tc, vmem_cap


def cbam_pallas(x_nchw, params, num_batch_blocks=None):
    w1, b1, w2, b2, wc_f, bias_f = params
    B, C, H, W = x_nchw.shape
    hid = w1.shape[1]
    HW = H * W
    K = wc_f.shape[-1]
    pad = (K - 1) // 2

    two_tc, vmem_cap = _device_info()
    if num_batch_blocks is None:
        nb = 2 if (two_tc and B >= 2) else 1  # v5e/v6e: fold all batches; v7x: 2-way parallel
    else:
        nb = num_batch_blocks
    nb = max(1, min(nb, B))
    while B % nb:
        nb -= 1
    BB = B // nb

    # Free reshape (contiguous trailing-dim collapse) — no transpose, no copy.
    x_flat = x_nchw.reshape(B, C, HW).astype(jnp.float32)

    # Tiny one-time weight re-layouts.
    w1t = jnp.transpose(w1).astype(jnp.float32)          # (hid, C)
    w2t = w2.astype(jnp.float32)                         # (hid, C)
    b2row = b2.reshape(1, C).astype(jnp.float32)
    scal = jnp.concatenate(                               # SMEM scalars: b1 ++ conv bias
        [b1.astype(jnp.float32).reshape(hid),
         jnp.asarray(bias_f, jnp.float32).reshape(1)])

    # Per-tap (conv weight x column-validity mask), packed over the
    # [BB max-rows ; BB mean-rows] sublane layout used in the kernel.
    col = jnp.arange(HW, dtype=jnp.int32) % W
    maskf = jnp.stack(
        [((col + dw - pad >= 0) & (col + dw - pad < W)).astype(jnp.float32)
         for dw in range(K)])                             # (K, HW)
    mask_taps = maskf[jnp.arange(K * K) % K]              # (K*K, HW)
    w_rows = jnp.concatenate(
        [jnp.broadcast_to(wc_f[0, 0].reshape(K * K, 1), (K * K, BB)),
         jnp.broadcast_to(wc_f[0, 1].reshape(K * K, 1), (K * K, BB))],
        axis=1).astype(jnp.float32)                       # (K*K, 2*BB)
    wm = w_rows[:, :, None] * mask_taps[:, None, :]       # (K*K, 2*BB, HW)

    PADF = pad * (W + 1)
    blk_bytes = BB * C * HW * 4
    vmem_limit = int(min(vmem_cap, max(32 * 1024 * 1024, 6 * blk_bytes)))

    out_flat = pl.pallas_call(
        functools.partial(cbam_kernel, H=H, W=W, K=K, hid=hid),
        out_shape=jax.ShapeDtypeStruct((B, C, HW), jnp.float32),
        grid=(nb,),
        in_specs=[
            pl.BlockSpec((BB, C, HW), lambda g: (g, 0, 0)),
            pl.BlockSpec((hid, C), lambda g: (0, 0)),
            pl.BlockSpec((hid, C), lambda g: (0, 0)),
            pl.BlockSpec((1, C), lambda g: (0, 0)),
            pl.BlockSpec((K * K, 2 * BB, HW), lambda g: (0, 0, 0)),
            pl.BlockSpec(memory_space=pltpu.MemorySpace.SMEM),
        ],
        out_specs=pl.BlockSpec((BB, C, HW), lambda g: (g, 0, 0)),
        scratch_shapes=[pltpu.VMEM((2 * BB, HW + 2 * PADF), jnp.float32)],
        compiler_params=pltpu.CompilerParams(
            dimension_semantics=("parallel",),
            vmem_limit_bytes=vmem_limit,
        ),
    )(x_flat, w1t, w2t, b2row, wm, scal)

    return out_flat.reshape(B, C, H, W)                   # free reshape back


def init_params(C, reduction_ratio=16):
    """Deterministic synthetic parameters matching CBAM(gate_channels=C)."""
    hid = max(C // reduction_ratio, 1)
    key = jax.random.PRNGKey(0)
    k1, k2, k3, k4, k5, kx = jax.random.split(key, 6)
    w1 = jax.random.normal(k1, (C, hid), jnp.float32) * 0.2     # Linear(C, C//r)
    b1 = jax.random.normal(k2, (hid,), jnp.float32) * 0.1
    w2 = jax.random.normal(k3, (hid, C), jnp.float32) * 0.2     # Linear(C//r, C)
    b2 = jax.random.normal(k4, (C,), jnp.float32) * 0.1
    wc = jax.random.normal(k5, (1, 2, 7, 7), jnp.float32) * 0.2  # Conv2d(2,1,7)
    # BatchNorm2d(1) eval-mode params, folded into conv weight + bias.
    gamma, beta = jnp.float32(1.2), jnp.float32(0.1)
    rmean, rvar, eps = jnp.float32(0.05), jnp.float32(0.8), 1e-5
    s = gamma / jnp.sqrt(rvar + eps)
    wc_f = wc * s
    bias_f = beta - rmean * s
    return (w1, b1, w2, b2, wc_f, bias_f), kx


def cbam_ref(x, w1, b1, w2, b2, wc_f, bias_f):
    """Pure-JAX reference (NCHW), mirrors the PyTorch forward (BN in eval mode)."""
    def sig(v):
        return 1.0 / (1.0 + jnp.exp(-v))

    def mlp(v):
        return jnp.maximum(v @ w1 + b1, 0.0) @ w2 + b2

    avg = x.mean(axis=(2, 3))
    mx = x.max(axis=(2, 3))
    att = mlp(avg) + mlp(mx)
    xcg = x * sig(att)[:, :, None, None]
    comp = jnp.concatenate(
        [xcg.max(axis=1, keepdims=True), xcg.mean(axis=1, keepdims=True)], axis=1)
    conv = lax.conv_general_dilated(
        comp, wc_f, (1, 1), [(3, 3), (3, 3)],
        dimension_numbers=("NCHW", "OIHW", "NCHW")) + bias_f
    return xcg * sig(conv)


if __name__ == "__main__":
    B, C, H, W = 2, 32, 16, 16     # gate_channels=32, reduction=16 -> hidden=2
    params, kx = init_params(C)
    x = jax.random.normal(kx, (B, C, H, W), jnp.float32)

    out = jax.block_until_ready(cbam_pallas(x, params))

    ref = cbam_ref(x, *params)
    assert out.shape == x.shape
    err = float(jnp.max(jnp.abs(out - ref)))
    assert jnp.allclose(out, ref, atol=1e-4, rtol=1e-4), err
    print("KERNEL_OK")
</pallas_src>

<mosaic_0001>
module attributes {stable_mosaic.version = 11 : i64} {
  func.func @cbam_kernel(%arg0: i32, %arg1: memref<2x32x256xf32, #tpu.memory_space<vmem>>, %arg2: memref<2x32xf32, #tpu.memory_space<vmem>>, %arg3: memref<2x32xf32, #tpu.memory_space<vmem>>, %arg4: memref<1x32xf32, #tpu.memory_space<vmem>>, %arg5: memref<49x4x256xf32, #tpu.memory_space<vmem>>, %arg6: memref<3xf32, #tpu.memory_space<smem>>, %arg7: memref<2x32x256xf32, #tpu.memory_space<vmem>>, %arg8: memref<4x358xf32, #tpu.memory_space<vmem>>) attributes {dimension_semantics = [#tpu.dimension_semantics<parallel>], iteration_bounds = array<i64: 1>, scalar_prefetch = 0 : i64, scratch_operands = 1 : i64, tpu.core_type = #tpu.core_type<tc>, window_params = [{transform_indices = @transform_0, window_bounds = array<i64: 2, 32, 256>}, {pipeline_mode = #tpu.pipeline_mode<synchronous>, transform_indices = @transform_1, window_bounds = array<i64: 2, 32>}, {pipeline_mode = #tpu.pipeline_mode<synchronous>, transform_indices = @transform_2, window_bounds = array<i64: 2, 32>}, {pipeline_mode = #tpu.pipeline_mode<synchronous>, transform_indices = @transform_3, window_bounds = array<i64: 1, 32>}, {pipeline_mode = #tpu.pipeline_mode<synchronous>, transform_indices = @transform_4, window_bounds = array<i64: 49, 4, 256>}, {transform_indices = @transform_5, window_bounds = array<i64: 3>}, {transform_indices = @transform_6, window_bounds = array<i64: 2, 32, 256>}]} {
    %c0 = arith.constant 0 : index
    %c0_0 = arith.constant 0 : index
    %c0_1 = arith.constant 0 : index
    %0 = vector.load %arg1[%c0, %c0_0, %c0_1] : memref<2x32x256xf32, #tpu.memory_space<vmem>>, vector<2x32x256xf32>
    %cst = arith.constant dense<0.000000e+00> : vector<2x32xf32>
    %1 = vector.multi_reduction <add>, %0, %cst [2] : vector<2x32x256xf32> to vector<2x32xf32>
    %cst_2 = arith.constant 2.560000e+02 : f32
    %2 = vector.broadcast %cst_2 : f32 to vector<2x32xf32>
    %3 = arith.divf %1, %2 : vector<2x32xf32>
    %cst_3 = arith.constant dense<0xFF800000> : vector<2x32xf32>
    %4 = vector.multi_reduction <maximumf>, %0, %cst_3 [2] : vector<2x32x256xf32> to vector<2x32xf32>
    %c0_4 = arith.constant 0 : index
    %c0_5 = arith.constant 0 : index
    %5 = vector.load %arg2[%c0_4, %c0_5] : memref<2x32xf32, #tpu.memory_space<vmem>>, vector<2x32xf32>
    %c0_6 = arith.constant 0 : index
    %c0_7 = arith.constant 0 : index
    %6 = vector.load %arg3[%c0_6, %c0_7] : memref<2x32xf32, #tpu.memory_space<vmem>>, vector<2x32xf32>
    %c0_8 = arith.constant 0 : index
    %c0_9 = arith.constant 0 : index
    %7 = vector.load %arg4[%c0_8, %c0_9] : memref<1x32xf32, #tpu.memory_space<vmem>>, vector<1x32xf32>
    %cst_10 = arith.constant 2.000000e+00 : f32
    %8 = vector.broadcast %cst_10 : f32 to vector<1x32xf32>
    %9 = arith.mulf %8, %7 : vector<1x32xf32>
    %10 = vector.extract_strided_slice %5 {offsets = [0, 0], sizes = [1, 32], strides = [1, 1]} : vector<2x32xf32> to vector<1x32xf32>
    %11 = vector.broadcast %10 : vector<1x32xf32> to vector<2x32xf32>
    %12 = arith.mulf %3, %11 : vector<2x32xf32>
    %cst_11 = arith.constant dense<0.000000e+00> : vector<2xf32>
    %13 = vector.multi_reduction <add>, %12, %cst_11 [1] : vector<2x32xf32> to vector<2xf32>
    %14 = vector.shape_cast %13 : vector<2xf32> to vector<2x1xf32>
    %c0_12 = arith.constant 0 : index
    %15 = memref.load %arg6[%c0_12] : memref<3xf32, #tpu.memory_space<smem>>
    %16 = vector.broadcast %15 : f32 to vector<2x1xf32>
    %17 = arith.addf %14, %16 : vector<2x1xf32>
    %cst_13 = arith.constant 0.000000e+00 : f32
    %18 = vector.broadcast %cst_13 : f32 to vector<2x1xf32>
    %19 = arith.maximumf %17, %18 : vector<2x1xf32>
    %20 = vector.extract_strided_slice %6 {offsets = [0, 0], sizes = [1, 32], strides = [1, 1]} : vector<2x32xf32> to vector<1x32xf32>
    %21 = vector.broadcast %19 : vector<2x1xf32> to vector<2x32xf32>
    %22 = vector.broadcast %20 : vector<1x32xf32> to vector<2x32xf32>
    %23 = arith.mulf %21, %22 : vector<2x32xf32>
    %24 = vector.broadcast %9 : vector<1x32xf32> to vector<2x32xf32>
    %25 = arith.addf %24, %23 : vector<2x32xf32>
    %26 = vector.extract_strided_slice %5 {offsets = [1, 0], sizes = [1, 32], strides = [1, 1]} : vector<2x32xf32> to vector<1x32xf32>
    %27 = vector.broadcast %26 : vector<1x32xf32> to vector<2x32xf32>
    %28 = arith.mulf %3, %27 : vector<2x32xf32>
    %cst_14 = arith.constant dense<0.000000e+00> : vector<2xf32>
    %29 = vector.multi_reduction <add>, %28, %cst_14 [1] : vector<2x32xf32> to vector<2xf32>
    %30 = vector.shape_cast %29 : vector<2xf32> to vector<2x1xf32>
    %c1 = arith.constant 1 : index
    %31 = memref.load %arg6[%c1] : memref<3xf32, #tpu.memory_space<smem>>
    %32 = vector.broadcast %31 : f32 to vector<2x1xf32>
    %33 = arith.addf %30, %32 : vector<2x1xf32>
    %cst_15 = arith.constant 0.000000e+00 : f32
    %34 = vector.broadcast %cst_15 : f32 to vector<2x1xf32>
    %35 = arith.maximumf %33, %34 : vector<2x1xf32>
    %36 = vector.extract_strided_slice %6 {offsets = [1, 0], sizes = [1, 32], strides = [1, 1]} : vector<2x32xf32> to vector<1x32xf32>
    %37 = vector.broadcast %35 : vector<2x1xf32> to vector<2x32xf32>
    %38 = vector.broadcast %36 : vector<1x32xf32> to vector<2x32xf32>
    %39 = arith.mulf %37, %38 : vector<2x32xf32>
    %40 = arith.addf %25, %39 : vector<2x32xf32>
    %41 = vector.extract_strided_slice %5 {offsets = [0, 0], sizes = [1, 32], strides = [1, 1]} : vector<2x32xf32> to vector<1x32xf32>
    %42 = vector.broadcast %41 : vector<1x32xf32> to vector<2x32xf32>
    %43 = arith.mulf %4, %42 : vector<2x32xf32>
    %cst_16 = arith.constant dense<0.000000e+00> : vector<2xf32>
    %44 = vector.multi_reduction <add>, %43, %cst_16 [1] : vector<2x32xf32> to vector<2xf32>
    %45 = vector.shape_cast %44 : vector<2xf32> to vector<2x1xf32>
    %c0_17 = arith.constant 0 : index
    %46 = memref.load %arg6[%c0_17] : memref<3xf32, #tpu.memory_space<smem>>
    %47 = vector.broadcast %46 : f32 to vector<2x1xf32>
    %48 = arith.addf %45, %47 : vector<2x1xf32>
    %cst_18 = arith.constant 0.000000e+00 : f32
    %49 = vector.broadcast %cst_18 : f32 to vector<2x1xf32>
    %50 = arith.maximumf %48, %49 : vector<2x1xf32>
    %51 = vector.extract_strided_slice %6 {offsets = [0, 0], sizes = [1, 32], strides = [1, 1]} : vector<2x32xf32> to vector<1x32xf32>
    %52 = vector.broadcast %50 : vector<2x1xf32> to vector<2x32xf32>
    %53 = vector.broadcast %51 : vector<1x32xf32> to vector<2x32xf32>
    %54 = arith.mulf %52, %53 : vector<2x32xf32>
    %55 = arith.addf %40, %54 : vector<2x32xf32>
    %56 = vector.extract_strided_slice %5 {offsets = [1, 0], sizes = [1, 32], strides = [1, 1]} : vector<2x32xf32> to vector<1x32xf32>
    %57 = vector.broadcast %56 : vector<1x32xf32> to vector<2x32xf32>
    %58 = arith.mulf %4, %57 : vector<2x32xf32>
    %cst_19 = arith.constant dense<0.000000e+00> : vector<2xf32>
    %59 = vector.multi_reduction <add>, %58, %cst_19 [1] : vector<2x32xf32> to vector<2xf32>
    %60 = vector.shape_cast %59 : vector<2xf32> to vector<2x1xf32>
    %c1_20 = arith.constant 1 : index
    %61 = memref.load %arg6[%c1_20] : memref<3xf32, #tpu.memory_space<smem>>
    %62 = vector.broadcast %61 : f32 to vector<2x1xf32>
    %63 = arith.addf %60, %62 : vector<2x1xf32>
    %cst_21 = arith.constant 0.000000e+00 : f32
    %64 = vector.broadcast %cst_21 : f32 to vector<2x1xf32>
    %65 = arith.maximumf %63, %64 : vector<2x1xf32>
    %66 = vector.extract_strided_slice %6 {offsets = [1, 0], sizes = [1, 32], strides = [1, 1]} : vector<2x32xf32> to vector<1x32xf32>
    %67 = vector.broadcast %65 : vector<2x1xf32> to vector<2x32xf32>
    %68 = vector.broadcast %66 : vector<1x32xf32> to vector<2x32xf32>
    %69 = arith.mulf %67, %68 : vector<2x32xf32>
    %70 = arith.addf %55, %69 : vector<2x32xf32>
    %cst_22 = arith.constant 0.000000e+00 : f32
    %71 = vector.broadcast %cst_22 : f32 to vector<2x32xf32>
    %72 = arith.subf %71, %70 : vector<2x32xf32>
    %73 = math.exp %72 : vector<2x32xf32>
    %cst_23 = arith.constant 1.000000e+00 : f32
    %74 = vector.broadcast %cst_23 : f32 to vector<2x32xf32>
    %75 = arith.addf %74, %73 : vector<2x32xf32>
    %cst_24 = arith.constant 1.000000e+00 : f32
    %76 = vector.broadcast %cst_24 : f32 to vector<2x32xf32>
    %77 = arith.divf %76, %75 : vector<2x32xf32>
    %78 = vector.shape_cast %77 : vector<2x32xf32> to vector<2x32x1xf32>
    %79 = vector.broadcast %78 : vector<2x32x1xf32> to vector<2x32x256xf32>
    %80 = arith.mulf %0, %79 : vector<2x32x256xf32>
    %cst_25 = arith.constant dense<0xFF800000> : vector<2x256xf32>
    %81 = vector.multi_reduction <maximumf>, %80, %cst_25 [1] : vector<2x32x256xf32> to vector<2x256xf32>
    %cst_26 = arith.constant dense<0.000000e+00> : vector<2x256xf32>
    %82 = vector.multi_reduction <add>, %80, %cst_26 [1] : vector<2x32x256xf32> to vector<2x256xf32>
    %cst_27 = arith.constant 3.200000e+01 : f32
    %83 = vector.broadcast %cst_27 : f32 to vector<2x256xf32>
    %84 = arith.divf %82, %83 : vector<2x256xf32>
    %85 = tpu.concatenate %81, %84 in 0 : vector<2x256xf32>, vector<2x256xf32> -> vector<4x256xf32>
    %cst_28 = arith.constant 0.000000e+00 : f32
    %86 = vector.broadcast %cst_28 : f32 to vector<4x51xf32>
    %87 = tpu.concatenate %86, %85, %86 in 1 : vector<4x51xf32>, vector<4x256xf32>, vector<4x51xf32> -> vector<4x358xf32>
    %c0_29 = arith.constant 0 : index
    %c0_30 = arith.constant 0 : index
    %88 = vector.load %arg8[%c0_29, %c0_30] : memref<4x358xf32, #tpu.memory_space<vmem>>, vector<4x358xf32>
    tpu.vector_store %arg8[%c0_29, %c0_30], %87 {strides = array<i32>} : memref<4x358xf32, #tpu.memory_space<vmem>>, vector<4x358xf32>,
    %cst_31 = arith.constant 0.000000e+00 : f32
    %89 = vector.broadcast %cst_31 : f32 to vector<4x256xf32>
    %c0_32 = arith.constant 0 : index
    %c0_33 = arith.constant 0 : index
    %90 = vector.load %arg8[%c0_32, %c0_33] : memref<4x358xf32, #tpu.memory_space<vmem>>, vector<4x256xf32>
    %c0_34 = arith.constant 0 : index
    %c0_35 = arith.constant 0 : index
    %c0_36 = arith.constant 0 : index
    %91 = vector.load %arg5[%c0_34, %c0_35, %c0_36] : memref<49x4x256xf32, #tpu.memory_space<vmem>>, vector<1x4x256xf32>
    %92 = vector.shape_cast %91 : vector<1x4x256xf32> to vector<4x256xf32>
    %93 = arith.mulf %92, %90 : vector<4x256xf32>
    %94 = arith.addf %89, %93 : vector<4x256xf32>
    %c0_37 = arith.constant 0 : index
    %c1_38 = arith.constant 1 : index
    %95 = vector.load %arg8[%c0_37, %c1_38] : memref<4x358xf32, #tpu.memory_space<vmem>>, vector<4x256xf32>
    %c1_39 = arith.constant 1 : index
    %c0_40 = arith.constant 0 : index
    %c0_41 = arith.constant 0 : index
    %96 = vector.load %arg5[%c1_39, %c0_40, %c0_41] : memref<49x4x256xf32, #tpu.memory_space<vmem>>, vector<1x4x256xf32>
    %97 = vector.shape_cast %96 : vector<1x4x256xf32> to vector<4x256xf32>
    %98 = arith.mulf %97, %95 : vector<4x256xf32>
    %99 = arith.addf %94, %98 : vector<4x256xf32>
    %c0_42 = arith.constant 0 : index
    %c2 = arith.constant 2 : index
    %100 = vector.load %arg8[%c0_42, %c2] : memref<4x358xf32, #tpu.memory_space<vmem>>, vector<4x256xf32>
    %c2_43 = arith.constant 2 : index
    %c0_44 = arith.constant 0 : index
    %c0_45 = arith.constant 0 : index
    %101 = vector.load %arg5[%c2_43, %c0_44, %c0_45] : memref<49x4x256xf32, #tpu.memory_space<vmem>>, vector<1x4x256xf32>
    %102 = vector.shape_cast %101 : vector<1x4x256xf32> to vector<4x256xf32>
    %103 = arith.mulf %102, %100 : vector<4x256xf32>
    %104 = arith.addf %99, %103 : vector<4x256xf32>
    %c0_46 = arith.constant 0 : index
    %c3 = arith.constant 3 : index
    %105 = vector.load %arg8[%c0_46, %c3] : memref<4x358xf32, #tpu.memory_space<vmem>>, vector<4x256xf32>
    %c3_47 = arith.constant 3 : index
    %c0_48 = arith.constant 0 : index
    %c0_49 = arith.constant 0 : index
    %106 = vector.load %arg5[%c3_47, %c0_48, %c0_49] : memref<49x4x256xf32, #tpu.memory_space<vmem>>, vector<1x4x256xf32>
    %107 = vector.shape_cast %106 : vector<1x4x256xf32> to vector<4x256xf32>
    %108 = arith.mulf %107, %105 : vector<4x256xf32>
    %109 = arith.addf %104, %108 : vector<4x256xf32>
    %c0_50 = arith.constant 0 : index
    %c4 = arith.constant 4 : index
    %110 = vector.load %arg8[%c0_50, %c4] : memref<4x358xf32, #tpu.memory_space<vmem>>, vector<4x256xf32>
    %c4_51 = arith.constant 4 : index
    %c0_52 = arith.constant 0 : index
    %c0_53 = arith.constant 0 : index
    %111 = vector.load %arg5[%c4_51, %c0_52, %c0_53] : memref<49x4x256xf32, #tpu.memory_space<vmem>>, vector<1x4x256xf32>
    %112 = vector.shape_cast %111 : vector<1x4x256xf32> to vector<4x256xf32>
    %113 = arith.mulf %112, %110 : vector<4x256xf32>
    %114 = arith.addf %109, %113 : vector<4x256xf32>
    %c0_54 = arith.constant 0 : index
    %c5 = arith.constant 5 : index
    %115 = vector.load %arg8[%c0_54, %c5] : memref<4x358xf32, #tpu.memory_space<vmem>>, vector<4x256xf32>
    %c5_55 = arith.constant 5 : index
    %c0_56 = arith.constant 0 : index
    %c0_57 = arith.constant 0 : index
    %116 = vector.load %arg5[%c5_55, %c0_56, %c0_57] : memref<49x4x256xf32, #tpu.memory_space<vmem>>, vector<1x4x256xf32>
    %117 = vector.shape_cast %116 : vector<1x4x256xf32> to vector<4x256xf32>
    %118 = arith.mulf %117, %115 : vector<4x256xf32>
    %119 = arith.addf %114, %118 : vector<4x256xf32>
    %c0_58 = arith.constant 0 : index
    %c6 = arith.constant 6 : index
    %120 = vector.load %arg8[%c0_58, %c6] : memref<4x358xf32, #tpu.memory_space<vmem>>, vector<4x256xf32>
    %c6_59 = arith.constant 6 : index
    %c0_60 = arith.constant 0 : index
    %c0_61 = arith.constant 0 : index
    %121 = vector.load %arg5[%c6_59, %c0_60, %c0_61] : memref<49x4x256xf32, #tpu.memory_space<vmem>>, vector<1x4x256xf32>
    %122 = vector.shape_cast %121 : vector<1x4x256xf32> to vector<4x256xf32>
    %123 = arith.mulf %122, %120 : vector<4x256xf32>
    %124 = arith.addf %119, %123 : vector<4x256xf32>
    %c0_62 = arith.constant 0 : index
    %c16 = arith.constant 16 : index
    %125 = vector.load %arg8[%c0_62, %c16] : memref<4x358xf32, #tpu.memory_space<vmem>>, vector<4x256xf32>
    %c7 = arith.constant 7 : index
    %c0_63 = arith.constant 0 : index
    %c0_64 = arith.constant 0 : index
    %126 = vector.load %arg5[%c7, %c0_63, %c0_64] : memref<49x4x256xf32, #tpu.memory_space<vmem>>, vector<1x4x256xf32>
    %127 = vector.shape_cast %126 : vector<1x4x256xf32> to vector<4x256xf32>
    %128 = arith.mulf %127, %125 : vector<4x256xf32>
    %129 = arith.addf %124, %128 : vector<4x256xf32>
    %c0_65 = arith.constant 0 : index
    %c17 = arith.constant 17 : index
    %130 = vector.load %arg8[%c0_65, %c17] : memref<4x358xf32, #tpu.memory_space<vmem>>, vector<4x256xf32>
    %c8 = arith.constant 8 : index
    %c0_66 = arith.constant 0 : index
    %c0_67 = arith.constant 0 : index
    %131 = vector.load %arg5[%c8, %c0_66, %c0_67] : memref<49x4x256xf32, #tpu.memory_space<vmem>>, vector<1x4x256xf32>
    %132 = vector.shape_cast %131 : vector<1x4x256xf32> to vector<4x256xf32>
    %133 = arith.mulf %132, %130 : vector<4x256xf32>
    %134 = arith.addf %129, %133 : vector<4x256xf32>
    %c0_68 = arith.constant 0 : index
    %c18 = arith.constant 18 : index
    %135 = vector.load %arg8[%c0_68, %c18] : memref<4x358xf32, #tpu.memory_space<vmem>>, vector<4x256xf32>
    %c9 = arith.constant 9 : index
    %c0_69 = arith.constant 0 : index
    %c0_70 = arith.constant 0 : index
    %136 = vector.load %arg5[%c9, %c0_69, %c0_70] : memref<49x4x256xf32, #tpu.memory_space<vmem>>, vector<1x4x256xf32>
    %137 = vector.shape_cast %136 : vector<1x4x256xf32> to vector<4x256xf32>
    %138 = arith.mulf %137, %135 : vector<4x256xf32>
    %139 = arith.addf %134, %138 : vector<4x256xf32>
    %c0_71 = arith.constant 0 : index
    %c19 = arith.constant 19 : index
    %140 = vector.load %arg8[%c0_71, %c19] : memref<4x358xf32, #tpu.memory_space<vmem>>, vector<4x256xf32>
    %c10 = arith.constant 10 : index
    %c0_72 = arith.constant 0 : index
    %c0_73 = arith.constant 0 : index
    %141 = vector.load %arg5[%c10, %c0_72, %c0_73] : memref<49x4x256xf32, #tpu.memory_space<vmem>>, vector<1x4x256xf32>
    %142 = vector.shape_cast %141 : vector<1x4x256xf32> to vector<4x256xf32>
    %143 = arith.mulf %142, %140 : vector<4x256xf32>
    %144 = arith.addf %139, %143 : vector<4x256xf32>
    %c0_74 = arith.constant 0 : index
    %c20 = arith.constant 20 : index
    %145 = vector.load %arg8[%c0_74, %c20] : memref<4x358xf32, #tpu.memory_space<vmem>>, vector<4x256xf32>
    %c11 = arith.constant 11 : index
    %c0_75 = arith.constant 0 : index
    %c0_76 = arith.constant 0 : index
    %146 = vector.load %arg5[%c11, %c0_75, %c0_76] : memref<49x4x256xf32, #tpu.memory_space<vmem>>, vector<1x4x256xf32>
    %147 = vector.shape_cast %146 : vector<1x4x256xf32> to vector<4x256xf32>
    %148 = arith.mulf %147, %145 : vector<4x256xf32>
    %149 = arith.addf %144, %148 : vector<4x256xf32>
    %c0_77 = arith.constant 0 : index
    %c21 = arith.constant 21 : index
    %150 = vector.load %arg8[%c0_77, %c21] : memref<4x358xf32, #tpu.memory_space<vmem>>, vector<4x256xf32>
    %c12 = arith.constant 12 : index
    %c0_78 = arith.constant 0 : index
    %c0_79 = arith.constant 0 : index
    %151 = vector.load %arg5[%c12, %c0_78, %c0_79] : memref<49x4x256xf32, #tpu.memory_space<vmem>>, vector<1x4x256xf32>
    %152 = vector.shape_cast %151 : vector<1x4x256xf32> to vector<4x256xf32>
    %153 = arith.mulf %152, %150 : vector<4x256xf32>
    %154 = arith.addf %149, %153 : vector<4x256xf32>
    %c0_80 = arith.constant 0 : index
    %c22 = arith.constant 22 : index
    %155 = vector.load %arg8[%c0_80, %c22] : memref<4x358xf32, #tpu.memory_space<vmem>>, vector<4x256xf32>
    %c13 = arith.constant 13 : index
    %c0_81 = arith.constant 0 : index
    %c0_82 = arith.constant 0 : index
    %156 = vector.load %arg5[%c13, %c0_81, %c0_82] : memref<49x4x256xf32, #tpu.memory_space<vmem>>, vector<1x4x256xf32>
    %157 = vector.shape_cast %156 : vector<1x4x256xf32> to vector<4x256xf32>
    %158 = arith.mulf %157, %155 : vector<4x256xf32>
    %159 = arith.addf %154, %158 : vector<4x256xf32>
    %c0_83 = arith.constant 0 : index
    %c32 = arith.constant 32 : index
    %160 = vector.load %arg8[%c0_83, %c32] : memref<4x358xf32, #tpu.memory_space<vmem>>, vector<4x256xf32>
    %c14 = arith.constant 14 : index
    %c0_84 = arith.constant 0 : index
    %c0_85 = arith.constant 0 : index
    %161 = vector.load %arg5[%c14, %c0_84, %c0_85] : memref<49x4x256xf32, #tpu.memory_space<vmem>>, vector<1x4x256xf32>
    %162 = vector.shape_cast %161 : vector<1x4x256xf32> to vector<4x256xf32>
    %163 = arith.mulf %162, %160 : vector<4x256xf32>
    %164 = arith.addf %159, %163 : vector<4x256xf32>
    %c0_86 = arith.constant 0 : index
    %c33 = arith.constant 33 : index
    %165 = vector.load %arg8[%c0_86, %c33] : memref<4x358xf32, #tpu.memory_space<vmem>>, vector<4x256xf32>
    %c15 = arith.constant 15 : index
    %c0_87 = arith.constant 0 : index
    %c0_88 = arith.constant 0 : index
    %166 = vector.load %arg5[%c15, %c0_87, %c0_88] : memref<49x4x256xf32, #tpu.memory_space<vmem>>, vector<1x4x256xf32>
    %167 = vector.shape_cast %166 : vector<1x4x256xf32> to vector<4x256xf32>
    %168 = arith.mulf %167, %165 : vector<4x256xf32>
    %169 = arith.addf %164, %168 : vector<4x256xf32>
    %c0_89 = arith.constant 0 : index
    %c34 = arith.constant 34 : index
    %170 = vector.load %arg8[%c0_89, %c34] : memref<4x358xf32, #tpu.memory_space<vmem>>, vector<4x256xf32>
    %c16_90 = arith.constant 16 : index
    %c0_91 = arith.constant 0 : index
    %c0_92 = arith.constant 0 : index
    %171 = vector.load %arg5[%c16_90, %c0_91, %c0_92] : memref<49x4x256xf32, #tpu.memory_space<vmem>>, vector<1x4x256xf32>
    %172 = vector.shape_cast %171 : vector<1x4x256xf32> to vector<4x256xf32>
    %173 = arith.mulf %172, %170 : vector<4x256xf32>
    %174 = arith.addf %169, %173 : vector<4x256xf32>
    %c0_93 = arith.constant 0 : index
    %c35 = arith.constant 35 : index
    %175 = vector.load %arg8[%c0_93, %c35] : memref<4x358xf32, #tpu.memory_space<vmem>>, vector<4x256xf32>
    %c17_94 = arith.constant 17 : index
    %c0_95 = arith.constant 0 : index
    %c0_96 = arith.constant 0 : index
    %176 = vector.load %arg5[%c17_94, %c0_95, %c0_96] : memref<49x4x256xf32, #tpu.memory_space<vmem>>, vector<1x4x256xf32>
    %177 = vector.shape_cast %176 : vector<1x4x256xf32> to vector<4x256xf32>
    %178 = arith.mulf %177, %175 : vector<4x256xf32>
    %179 = arith.addf %174, %178 : vector<4x256xf32>
    %c0_97 = arith.constant 0 : index
    %c36 = arith.constant 36 : index
    %180 = vector.load %arg8[%c0_97, %c36] : memref<4x358xf32, #tpu.memory_space<vmem>>, vector<4x256xf32>
    %c18_98 = arith.constant 18 : index
    %c0_99 = arith.constant 0 : index
    %c0_100 = arith.constant 0 : index
    %181 = vector.load %arg5[%c18_98, %c0_99, %c0_100] : memref<49x4x256xf32, #tpu.memory_space<vmem>>, vector<1x4x256xf32>
    %182 = vector.shape_cast %181 : vector<1x4x256xf32> to vector<4x256xf32>
    %183 = arith.mulf %182, %180 : vector<4x256xf32>
    %184 = arith.addf %179, %183 : vector<4x256xf32>
    %c0_101 = arith.constant 0 : index
    %c37 = arith.constant 37 : index
    %185 = vector.load %arg8[%c0_101, %c37] : memref<4x358xf32, #tpu.memory_space<vmem>>, vector<4x256xf32>
    %c19_102 = arith.constant 19 : index
    %c0_103 = arith.constant 0 : index
    %c0_104 = arith.constant 0 : index
    %186 = vector.load %arg5[%c19_102, %c0_103, %c0_104] : memref<49x4x256xf32, #tpu.memory_space<vmem>>, vector<1x4x256xf32>
    %187 = vector.shape_cast %186 : vector<1x4x256xf32> to vector<4x256xf32>
    %188 = arith.mulf %187, %185 : vector<4x256xf32>
    %189 = arith.addf %184, %188 : vector<4x256xf32>
    %c0_105 = arith.constant 0 : index
    %c38 = arith.constant 38 : index
    %190 = vector.load %arg8[%c0_105, %c38] : memref<4x358xf32, #tpu.memory_space<vmem>>, vector<4x256xf32>
    %c20_106 = arith.constant 20 : index
    %c0_107 = arith.constant 0 : index
    %c0_108 = arith.constant 0 : index
    %191 = vector.load %arg5[%c20_106, %c0_107, %c0_108] : memref<49x4x256xf32, #tpu.memory_space<vmem>>, vector<1x4x256xf32>
    %192 = vector.shape_cast %191 : vector<1x4x256xf32> to vector<4x256xf32>
    %193 = arith.mulf %192, %190 : vector<4x256xf32>
    %194 = arith.addf %189, %193 : vector<4x256xf32>
    %c0_109 = arith.constant 0 : index
    %c48 = arith.constant 48 : index
    %195 = vector.load %arg8[%c0_109, %c48] : memref<4x358xf32, #tpu.memory_space<vmem>>, vector<4x256xf32>
    %c21_110 = arith.constant 21 : index
    %c0_111 = arith.constant 0 : index
    %c0_112 = arith.constant 0 : index
    %196 = vector.load %arg5[%c21_110, %c0_111, %c0_112] : memref<49x4x256xf32, #tpu.memory_space<vmem>>, vector<1x4x256xf32>
    %197 = vector.shape_cast %196 : vector<1x4x256xf32> to vector<4x256xf32>
    %198 = arith.mulf %197, %195 : vector<4x256xf32>
    %199 = arith.addf %194, %198 : vector<4x256xf32>
    %c0_113 = arith.constant 0 : index
    %c49 = arith.constant 49 : index
    %200 = vector.load %arg8[%c0_113, %c49] : memref<4x358xf32, #tpu.memory_space<vmem>>, vector<4x256xf32>
    %c22_114 = arith.constant 22 : index
    %c0_115 = arith.constant 0 : index
    %c0_116 = arith.constant 0 : index
    %201 = vector.load %arg5[%c22_114, %c0_115, %c0_116] : memref<49x4x256xf32, #tpu.memory_space<vmem>>, vector<1x4x256xf32>
    %202 = vector.shape_cast %201 : vector<1x4x256xf32> to vector<4x256xf32>
    %203 = arith.mulf %202, %200 : vector<4x256xf32>
    %204 = arith.addf %199, %203 : vector<4x256xf32>
    %c0_117 = arith.constant 0 : index
    %c50 = arith.constant 50 : index
    %205 = vector.load %arg8[%c0_117, %c50] : memref<4x358xf32, #tpu.memory_space<vmem>>, vector<4x256xf32>
    %c23 = arith.constant 23 : index
    %c0_118 = arith.constant 0 : index
    %c0_119 = arith.constant 0 : index
    %206 = vector.load %arg5[%c23, %c0_118, %c0_119] : memref<49x4x256xf32, #tpu.memory_space<vmem>>, vector<1x4x256xf32>
    %207 = vector.shape_cast %206 : vector<1x4x256xf32> to vector<4x256xf32>
    %208 = arith.mulf %207, %205 : vector<4x256xf32>
    %209 = arith.addf %204, %208 : vector<4x256xf32>
    %c0_120 = arith.constant 0 : index
    %c51 = arith.constant 51 : index
    %210 = vector.load %arg8[%c0_120, %c51] : memref<4x358xf32, #tpu.memory_space<vmem>>, vector<4x256xf32>
    %c24 = arith.constant 24 : index
    %c0_121 = arith.constant 0 : index
    %c0_122 = arith.constant 0 : index
    %211 = vector.load %arg5[%c24, %c0_121, %c0_122] : memref<49x4x256xf32, #tpu.memory_space<vmem>>, vector<1x4x256xf32>
    %212 = vector.shape_cast %211 : vector<1x4x256xf32> to vector<4x256xf32>
    %213 = arith.mulf %212, %210 : vector<4x256xf32>
    %214 = arith.addf %209, %213 : vector<4x256xf32>
    %c0_123 = arith.constant 0 : index
    %c52 = arith.constant 52 : index
    %215 = vector.load %arg8[%c0_123, %c52] : memref<4x358xf32, #tpu.memory_space<vmem>>, vector<4x256xf32>
    %c25 = arith.constant 25 : index
    %c0_124 = arith.constant 0 : index
    %c0_125 = arith.constant 0 : index
    %216 = vector.load %arg5[%c25, %c0_124, %c0_125] : memref<49x4x256xf32, #tpu.memory_space<vmem>>, vector<1x4x256xf32>
    %217 = vector.shape_cast %216 : vector<1x4x256xf32> to vector<4x256xf32>
    %218 = arith.mulf %217, %215 : vector<4x256xf32>
    %219 = arith.addf %214, %218 : vector<4x256xf32>
    %c0_126 = arith.constant 0 : index
    %c53 = arith.constant 53 : index
    %220 = vector.load %arg8[%c0_126, %c53] : memref<4x358xf32, #tpu.memory_space<vmem>>, vector<4x256xf32>
    %c26 = arith.constant 26 : index
    %c0_127 = arith.constant 0 : index
    %c0_128 = arith.constant 0 : index
    %221 = vector.load %arg5[%c26, %c0_127, %c0_128] : memref<49x4x256xf32, #tpu.memory_space<vmem>>, vector<1x4x256xf32>
    %222 = vector.shape_cast %221 : vector<1x4x256xf32> to vector<4x256xf32>
    %223 = arith.mulf %222, %220 : vector<4x256xf32>
    %224 = arith.addf %219, %223 : vector<4x256xf32>
    %c0_129 = arith.constant 0 : index
    %c54 = arith.constant 54 : index
    %225 = vector.load %arg8[%c0_129, %c54] : memref<4x358xf32, #tpu.memory_space<vmem>>, vector<4x256xf32>
    %c27 = arith.constant 27 : index
    %c0_130 = arith.constant 0 : index
    %c0_131 = arith.constant 0 : index
    %226 = vector.load %arg5[%c27, %c0_130, %c0_131] : memref<49x4x256xf32, #tpu.memory_space<vmem>>, vector<1x4x256xf32>
    %227 = vector.shape_cast %226 : vector<1x4x256xf32> to vector<4x256xf32>
    %228 = arith.mulf %227, %225 : vector<4x256xf32>
    %229 = arith.addf %224, %228 : vector<4x256xf32>
    %c0_132 = arith.constant 0 : index
    %c64 = arith.constant 64 : index
    %230 = vector.load %arg8[%c0_132, %c64] : memref<4x358xf32, #tpu.memory_space<vmem>>, vector<4x256xf32>
    %c28 = arith.constant 28 : index
    %c0_133 = arith.constant 0 : index
    %c0_134 = arith.constant 0 : index
    %231 = vector.load %arg5[%c28, %c0_133, %c0_134] : memref<49x4x256xf32, #tpu.memory_space<vmem>>, vector<1x4x256xf32>
    %232 = vector.shape_cast %231 : vector<1x4x256xf32> to vector<4x256xf32>
    %233 = arith.mulf %232, %230 : vector<4x256xf32>
    %234 = arith.addf %229, %233 : vector<4x256xf32>
    %c0_135 = arith.constant 0 : index
    %c65 = arith.constant 65 : index
    %235 = vector.load %arg8[%c0_135, %c65] : memref<4x358xf32, #tpu.memory_space<vmem>>, vector<4x256xf32>
    %c29 = arith.constant 29 : index
    %c0_136 = arith.constant 0 : index
    %c0_137 = arith.constant 0 : index
    %236 = vector.load %arg5[%c29, %c0_136, %c0_137] : memref<49x4x256xf32, #tpu.memory_space<vmem>>, vector<1x4x256xf32>
    %237 = vector.shape_cast %236 : vector<1x4x256xf32> to vector<4x256xf32>
    %238 = arith.mulf %237, %235 : vector<4x256xf32>
    %239 = arith.addf %234, %238 : vector<4x256xf32>
    %c0_138 = arith.constant 0 : index
    %c66 = arith.constant 66 : index
    %240 = vector.load %arg8[%c0_138, %c66] : memref<4x358xf32, #tpu.memory_space<vmem>>, vector<4x256xf32>
    %c30 = arith.constant 30 : index
    %c0_139 = arith.constant 0 : index
    %c0_140 = arith.constant 0 : index
    %241 = vector.load %arg5[%c30, %c0_139, %c0_140] : memref<49x4x256xf32, #tpu.memory_space<vmem>>, vector<1x4x256xf32>
    %242 = vector.shape_cast %241 : vector<1x4x256xf32> to vector<4x256xf32>
    %243 = arith.mulf %242, %240 : vector<4x256xf32>
    %244 = arith.addf %239, %243 : vector<4x256xf32>
    %c0_141 = arith.constant 0 : index
    %c67 = arith.constant 67 : index
    %245 = vector.load %arg8[%c0_141, %c67] : memref<4x358xf32, #tpu.memory_space<vmem>>, vector<4x256xf32>
    %c31 = arith.constant 31 : index
    %c0_142 = arith.constant 0 : index
    %c0_143 = arith.constant 0 : index
    %246 = vector.load %arg5[%c31, %c0_142, %c0_143] : memref<49x4x256xf32, #tpu.memory_space<vmem>>, vector<1x4x256xf32>
    %247 = vector.shape_cast %246 : vector<1x4x256xf32> to vector<4x256xf32>
    %248 = arith.mulf %247, %245 : vector<4x256xf32>
    %249 = arith.addf %244, %248 : vector<4x256xf32>
    %c0_144 = arith.constant 0 : index
    %c68 = arith.constant 68 : index
    %250 = vector.load %arg8[%c0_144, %c68] : memref<4x358xf32, #tpu.memory_space<vmem>>, vector<4x256xf32>
    %c32_145 = arith.constant 32 : index
    %c0_146 = arith.constant 0 : index
    %c0_147 = arith.constant 0 : index
    %251 = vector.load %arg5[%c32_145, %c0_146, %c0_147] : memref<49x4x256xf32, #tpu.memory_space<vmem>>, vector<1x4x256xf32>
    %252 = vector.shape_cast %251 : vector<1x4x256xf32> to vector<4x256xf32>
    %253 = arith.mulf %252, %250 : vector<4x256xf32>
    %254 = arith.addf %249, %253 : vector<4x256xf32>
    %c0_148 = arith.constant 0 : index
    %c69 = arith.constant 69 : index
    %255 = vector.load %arg8[%c0_148, %c69] : memref<4x358xf32, #tpu.memory_space<vmem>>, vector<4x256xf32>
    %c33_149 = arith.constant 33 : index
    %c0_150 = arith.constant 0 : index
    %c0_151 = arith.constant 0 : index
    %256 = vector.load %arg5[%c33_149, %c0_150, %c0_151] : memref<49x4x256xf32, #tpu.memory_space<vmem>>, vector<1x4x256xf32>
    %257 = vector.shape_cast %256 : vector<1x4x256xf32> to vector<4x256xf32>
    %258 = arith.mulf %257, %255 : vector<4x256xf32>
    %259 = arith.addf %254, %258 : vector<4x256xf32>
    %c0_152 = arith.constant 0 : index
    %c70 = arith.constant 70 : index
    %260 = vector.load %arg8[%c0_152, %c70] : memref<4x358xf32, #tpu.memory_space<vmem>>, vector<4x256xf32>
    %c34_153 = arith.constant 34 : index
    %c0_154 = arith.constant 0 : index
    %c0_155 = arith.constant 0 : index
    %261 = vector.load %arg5[%c34_153, %c0_154, %c0_155] : memref<49x4x256xf32, #tpu.memory_space<vmem>>, vector<1x4x256xf32>
    %262 = vector.shape_cast %261 : vector<1x4x256xf32> to vector<4x256xf32>
    %263 = arith.mulf %262, %260 : vector<4x256xf32>
    %264 = arith.addf %259, %263 : vector<4x256xf32>
    %c0_156 = arith.constant 0 : index
    %c80 = arith.constant 80 : index
    %265 = vector.load %arg8[%c0_156, %c80] : memref<4x358xf32, #tpu.memory_space<vmem>>, vector<4x256xf32>
    %c35_157 = arith.constant 35 : index
    %c0_158 = arith.constant 0 : index
    %c0_159 = arith.constant 0 : index
    %266 = vector.load %arg5[%c35_157, %c0_158, %c0_159] : memref<49x4x256xf32, #tpu.memory_space<vmem>>, vector<1x4x256xf32>
    %267 = vector.shape_cast %266 : vector<1x4x256xf32> to vector<4x256xf32>
    %268 = arith.mulf %267, %265 : vector<4x256xf32>
    %269 = arith.addf %264, %268 : vector<4x256xf32>
    %c0_160 = arith.constant 0 : index
    %c81 = arith.constant 81 : index
    %270 = vector.load %arg8[%c0_160, %c81] : memref<4x358xf32, #tpu.memory_space<vmem>>, vector<4x256xf32>
    %c36_161 = arith.constant 36 : index
    %c0_162 = arith.constant 0 : index
    %c0_163 = arith.constant 0 : index
    %271 = vector.load %arg5[%c36_161, %c0_162, %c0_163] : memref<49x4x256xf32, #tpu.memory_space<vmem>>, vector<1x4x256xf32>
    %272 = vector.shape_cast %271 : vector<1x4x256xf32> to vector<4x256xf32>
    %273 = arith.mulf %272, %270 : vector<4x256xf32>
    %274 = arith.addf %269, %273 : vector<4x256xf32>
    %c0_164 = arith.constant 0 : index
    %c82 = arith.constant 82 : index
    %275 = vector.load %arg8[%c0_164, %c82] : memref<4x358xf32, #tpu.memory_space<vmem>>, vector<4x256xf32>
    %c37_165 = arith.constant 37 : index
    %c0_166 = arith.constant 0 : index
    %c0_167 = arith.constant 0 : index
    %276 = vector.load %arg5[%c37_165, %c0_166, %c0_167] : memref<49x4x256xf32, #tpu.memory_space<vmem>>, vector<1x4x256xf32>
    %277 = vector.shape_cast %276 : vector<1x4x256xf32> to vector<4x256xf32>
    %278 = arith.mulf %277, %275 : vector<4x256xf32>
    %279 = arith.addf %274, %278 : vector<4x256xf32>
    %c0_168 = arith.constant 0 : index
    %c83 = arith.constant 83 : index
    %280 = vector.load %arg8[%c0_168, %c83] : memref<4x358xf32, #tpu.memory_space<vmem>>, vector<4x256xf32>
    %c38_169 = arith.constant 38 : index
    %c0_170 = arith.constant 0 : index
    %c0_171 = arith.constant 0 : index
    %281 = vector.load %arg5[%c38_169, %c0_170, %c0_171] : memref<49x4x256xf32, #tpu.memory_space<vmem>>, vector<1x4x256xf32>
    %282 = vector.shape_cast %281 : vector<1x4x256xf32> to vector<4x256xf32>
    %283 = arith.mulf %282, %280 : vector<4x256xf32>
    %284 = arith.addf %279, %283 : vector<4x256xf32>
    %c0_172 = arith.constant 0 : index
    %c84 = arith.constant 84 : index
    %285 = vector.load %arg8[%c0_172, %c84] : memref<4x358xf32, #tpu.memory_space<vmem>>, vector<4x256xf32>
    %c39 = arith.constant 39 : index
    %c0_173 = arith.constant 0 : index
    %c0_174 = arith.constant 0 : index
    %286 = vector.load %arg5[%c39, %c0_173, %c0_174] : memref<49x4x256xf32, #tpu.memory_space<vmem>>, vector<1x4x256xf32>
    %287 = vector.shape_cast %286 : vector<1x4x256xf32> to vector<4x256xf32>
    %288 = arith.mulf %287, %285 : vector<4x256xf32>
    %289 = arith.addf %284, %288 : vector<4x256xf32>
    %c0_175 = arith.constant 0 : index
    %c85 = arith.constant 85 : index
    %290 = vector.load %arg8[%c0_175, %c85] : memref<4x358xf32, #tpu.memory_space<vmem>>, vector<4x256xf32>
    %c40 = arith.constant 40 : index
    %c0_176 = arith.constant 0 : index
    %c0_177 = arith.constant 0 : index
    %291 = vector.load %arg5[%c40, %c0_176, %c0_177] : memref<49x4x256xf32, #tpu.memory_space<vmem>>, vector<1x4x256xf32>
    %292 = vector.shape_cast %291 : vector<1x4x256xf32> to vector<4x256xf32>
    %293 = arith.mulf %292, %290 : vector<4x256xf32>
    %294 = arith.addf %289, %293 : vector<4x256xf32>
    %c0_178 = arith.constant 0 : index
    %c86 = arith.constant 86 : index
    %295 = vector.load %arg8[%c0_178, %c86] : memref<4x358xf32, #tpu.memory_space<vmem>>, vector<4x256xf32>
    %c41 = arith.constant 41 : index
    %c0_179 = arith.constant 0 : index
    %c0_180 = arith.constant 0 : index
    %296 = vector.load %arg5[%c41, %c0_179, %c0_180] : memref<49x4x256xf32, #tpu.memory_space<vmem>>, vector<1x4x256xf32>
    %297 = vector.shape_cast %296 : vector<1x4x256xf32> to vector<4x256xf32>
    %298 = arith.mulf %297, %295 : vector<4x256xf32>
    %299 = arith.addf %294, %298 : vector<4x256xf32>
    %c0_181 = arith.constant 0 : index
    %c96 = arith.constant 96 : index
    %300 = vector.load %arg8[%c0_181, %c96] : memref<4x358xf32, #tpu.memory_space<vmem>>, vector<4x256xf32>
    %c42 = arith.constant 42 : index
    %c0_182 = arith.constant 0 : index
    %c0_183 = arith.constant 0 : index
    %301 = vector.load %arg5[%c42, %c0_182, %c0_183] : memref<49x4x256xf32, #tpu.memory_space<vmem>>, vector<1x4x256xf32>
    %302 = vector.shape_cast %301 : vector<1x4x256xf32> to vector<4x256xf32>
    %303 = arith.mulf %302, %300 : vector<4x256xf32>
    %304 = arith.addf %299, %303 : vector<4x256xf32>
    %c0_184 = arith.constant 0 : index
    %c97 = arith.constant 97 : index
    %305 = vector.load %arg8[%c0_184, %c97] : memref<4x358xf32, #tpu.memory_space<vmem>>, vector<4x256xf32>
    %c43 = arith.constant 43 : index
    %c0_185 = arith.constant 0 : index
    %c0_186 = arith.constant 0 : index
    %306 = vector.load %arg5[%c43, %c0_185, %c0_186] : memref<49x4x256xf32, #tpu.memory_space<vmem>>, vector<1x4x256xf32>
    %307 = vector.shape_cast %306 : vector<1x4x256xf32> to vector<4x256xf32>
    %308 = arith.mulf %307, %305 : vector<4x256xf32>
    %309 = arith.addf %304, %308 : vector<4x256xf32>
    %c0_187 = arith.constant 0 : index
    %c98 = arith.constant 98 : index
    %310 = vector.load %arg8[%c0_187, %c98] : memref<4x358xf32, #tpu.memory_space<vmem>>, vector<4x256xf32>
    %c44 = arith.constant 44 : index
    %c0_188 = arith.constant 0 : index
    %c0_189 = arith.constant 0 : index
    %311 = vector.load %arg5[%c44, %c0_188, %c0_189] : memref<49x4x256xf32, #tpu.memory_space<vmem>>, vector<1x4x256xf32>
    %312 = vector.shape_cast %311 : vector<1x4x256xf32> to vector<4x256xf32>
    %313 = arith.mulf %312, %310 : vector<4x256xf32>
    %314 = arith.addf %309, %313 : vector<4x256xf32>
    %c0_190 = arith.constant 0 : index
    %c99 = arith.constant 99 : index
    %315 = vector.load %arg8[%c0_190, %c99] : memref<4x358xf32, #tpu.memory_space<vmem>>, vector<4x256xf32>
    %c45 = arith.constant 45 : index
    %c0_191 = arith.constant 0 : index
    %c0_192 = arith.constant 0 : index
    %316 = vector.load %arg5[%c45, %c0_191, %c0_192] : memref<49x4x256xf32, #tpu.memory_space<vmem>>, vector<1x4x256xf32>
    %317 = vector.shape_cast %316 : vector<1x4x256xf32> to vector<4x256xf32>
    %318 = arith.mulf %317, %315 : vector<4x256xf32>
    %319 = arith.addf %314, %318 : vector<4x256xf32>
    %c0_193 = arith.constant 0 : index
    %c100 = arith.constant 100 : index
    %320 = vector.load %arg8[%c0_193, %c100] : memref<4x358xf32, #tpu.memory_space<vmem>>, vector<4x256xf32>
    %c46 = arith.constant 46 : index
    %c0_194 = arith.constant 0 : index
    %c0_195 = arith.constant 0 : index
    %321 = vector.load %arg5[%c46, %c0_194, %c0_195] : memref<49x4x256xf32, #tpu.memory_space<vmem>>, vector<1x4x256xf32>
    %322 = vector.shape_cast %321 : vector<1x4x256xf32> to vector<4x256xf32>
    %323 = arith.mulf %322, %320 : vector<4x256xf32>
    %324 = arith.addf %319, %323 : vector<4x256xf32>
    %c0_196 = arith.constant 0 : index
    %c101 = arith.constant 101 : index
    %325 = vector.load %arg8[%c0_196, %c101] : memref<4x358xf32, #tpu.memory_space<vmem>>, vector<4x256xf32>
    %c47 = arith.constant 47 : index
    %c0_197 = arith.constant 0 : index
    %c0_198 = arith.constant 0 : index
    %326 = vector.load %arg5[%c47, %c0_197, %c0_198] : memref<49x4x256xf32, #tpu.memory_space<vmem>>, vector<1x4x256xf32>
    %327 = vector.shape_cast %326 : vector<1x4x256xf32> to vector<4x256xf32>
    %328 = arith.mulf %327, %325 : vector<4x256xf32>
    %329 = arith.addf %324, %328 : vector<4x256xf32>
    %c0_199 = arith.constant 0 : index
    %c102 = arith.constant 102 : index
    %330 = vector.load %arg8[%c0_199, %c102] : memref<4x358xf32, #tpu.memory_space<vmem>>, vector<4x256xf32>
    %c48_200 = arith.constant 48 : index
    %c0_201 = arith.constant 0 : index
    %c0_202 = arith.constant 0 : index
    %331 = vector.load %arg5[%c48_200, %c0_201, %c0_202] : memref<49x4x256xf32, #tpu.memory_space<vmem>>, vector<1x4x256xf32>
    %332 = vector.shape_cast %331 : vector<1x4x256xf32> to vector<4x256xf32>
    %333 = arith.mulf %332, %330 : vector<4x256xf32>
    %334 = arith.addf %329, %333 : vector<4x256xf32>
    %335 = vector.extract_strided_slice %334 {offsets = [0, 0], sizes = [2, 256], strides = [1, 1]} : vector<4x256xf32> to vector<2x256xf32>
    %336 = vector.extract_strided_slice %334 {offsets = [2, 0], sizes = [2, 256], strides = [1, 1]} : vector<4x256xf32> to vector<2x256xf32>
    %337 = arith.addf %335, %336 : vector<2x256xf32>
    %c2_203 = arith.constant 2 : index
    %338 = memref.load %arg6[%c2_203] : memref<3xf32, #tpu.memory_space<smem>>
    %339 = vector.broadcast %338 : f32 to vector<2x256xf32>
    %340 = arith.addf %337, %339 : vector<2x256xf32>
    %cst_204 = arith.constant 0.000000e+00 : f32
    %341 = vector.broadcast %cst_204 : f32 to vector<2x256xf32>
    %342 = arith.subf %341, %340 : vector<2x256xf32>
    %343 = math.exp %342 : vector<2x256xf32>
    %cst_205 = arith.constant 1.000000e+00 : f32
    %344 = vector.broadcast %cst_205 : f32 to vector<2x256xf32>
    %345 = arith.addf %344, %343 : vector<2x256xf32>
    %cst_206 = arith.constant 1.000000e+00 : f32
    %346 = vector.broadcast %cst_206 : f32 to vector<2x256xf32>
    %347 = arith.divf %346, %345 : vector<2x256xf32>
    %348 = vector.shape_cast %347 : vector<2x256xf32> to vector<2x1x256xf32>
    %349 = vector.broadcast %348 : vector<2x1x256xf32> to vector<2x32x256xf32>
    %350 = arith.mulf %80, %349 : vector<2x32x256xf32>
    %c0_207 = arith.constant 0 : index
    %c0_208 = arith.constant 0 : index
    %c0_209 = arith.constant 0 : index
    %351 = vector.load %arg7[%c0_207, %c0_208, %c0_209] : memref<2x32x256xf32, #tpu.memory_space<vmem>>, vector<2x32x256xf32>
    tpu.vector_store %arg7[%c0_207, %c0_208, %c0_209], %350 {strides = array<i32>} : memref<2x32x256xf32, #tpu.memory_space<vmem>>, vector<2x32x256xf32>,
    return
  }
  func.func @transform_0(%arg0: i32) -> (i32, i32, i32) {
    %c0_i32 = arith.constant 0 : i32
    %c0_i32_0 = arith.constant 0 : i32
    %c0_i32_1 = arith.constant 0 : i32
    return %arg0, %c0_i32, %c0_i32_0 : i32, i32, i32
  }
  func.func @transform_1(%arg0: i32) -> (i32, i32) {
    %c0_i32 = arith.constant 0 : i32
    %c0_i32_0 = arith.constant 0 : i32
    %c0_i32_1 = arith.constant 0 : i32
    return %c0_i32, %c0_i32_0 : i32, i32
  }
  func.func @transform_2(%arg0: i32) -> (i32, i32) {
    %c0_i32 = arith.constant 0 : i32
    %c0_i32_0 = arith.constant 0 : i32
    %c0_i32_1 = arith.constant 0 : i32
    return %c0_i32, %c0_i32_0 : i32, i32
  }
  func.func @transform_3(%arg0: i32) -> (i32, i32) {
    %c0_i32 = arith.constant 0 : i32
    %c0_i32_0 = arith.constant 0 : i32
    %c0_i32_1 = arith.constant 0 : i32
    return %c0_i32, %c0_i32_0 : i32, i32
  }
  func.func @transform_4(%arg0: i32) -> (i32, i32, i32) {
    %c0_i32 = arith.constant 0 : i32
    %c0_i32_0 = arith.constant 0 : i32
    %c0_i32_1 = arith.constant 0 : i32
    %c0_i32_2 = arith.constant 0 : i32
    return %c0_i32, %c0_i32_0, %c0_i32_1 : i32, i32, i32
  }
  func.func @transform_5(%arg0: i32) -> i32 {
    %c0_i32 = arith.constant 0 : i32
    %c0_i32_0 = arith.constant 0 : i32
    return %c0_i32 : i32
  }
  func.func @transform_6(%arg0: i32) -> (i32, i32, i32) {
    %c0_i32 = arith.constant 0 : i32
    %c0_i32_0 = arith.constant 0 : i32
    %c0_i32_1 = arith.constant 0 : i32
    return %arg0, %c0_i32, %c0_i32_0 : i32, i32, i32
  }
}

</mosaic_0001>

<bundles_post_ra>
// kernel: tpu_custom_call.1
= control target key start
LH: loop header
LB: loop body
LE: loop exit
PB: predicated region body
PF: predicated region fallthrough
CT: control target
= control target key end

     0   :  { %11 = vsyncpa [#allocation4], 0  ;;  %s2412_s0 = inlined_call_operand.hbm [shape: f32[2,32,256], index: 0, kind: input, shape index: {}]   ;;  %s2413_s1 = inlined_call_operand.vmem [shape: f32[2,32], index: 1, kind: input, shape index: {}]   ;;  %s2414_s2 = inlined_call_operand.vmem [shape: f32[2,32], index: 2, kind: input, shape index: {}]   ;;  %s2415_s3 = inlined_call_operand.vmem [shape: f32[1,32], index: 3, kind: input, shape index: {}]   ;;  %s2416_s4 = inlined_call_operand.hbm [shape: f32[49,4,256], index: 4, kind: input, shape index: {}]   ;;  %s2417_s5 = inlined_call_operand.vmem [shape: f32[3], index: 5, kind: input, shape index: {}]   ;;  %s2418_s6 = inlined_call_operand.hbm [shape: f32[2,32,256], index: 6, kind: output, shape index: {}]  }
   0x1   :  { %12 = vsyncpa [#allocation8], 0 }
   0x2   :  { %13 = vsyncpa [#allocation6], 0 }
   0x3   :  { %14 = vsyncpa [#allocation5], 0  ;;  %s1687_s21 = smov [#allocation3]   ;;  %s1601_s25 = scalar_lea.hbm %s2412_s0, 2048 }
   0x4   :  { %s20_s22 = sshll.u32 %s1687_s21, 4  ;;  %p1602_p0 = scmp.ne.s32.totalorder %s2412_s0, %s1601_s25  ;;  %s21_s22 = int_to_ptr.vmem [resolvable:$true] %s20_s22 }
   0x5   :  { %p1605_p1 = scmp.lt.u32.totalorder %s1601_s25, %s2412_s0 }
   0x7   :  { %p1607_p2 = pnand %p1605_p1, %p1602_p0 }
   0x9   :  { %1610 = shalt.err (!%p1607_p2)
}
   0xa   :  { %s1611_s30 = scalar_lea.vmem %s21_s22, 2048  ;;  %p1616_p4 = scmp.lt.s32.totalorder %s21_s22, %s21_s22 }
   0xb   :  { %p1612_p3 = scmp.ne.s32.totalorder %s21_s22, %s1611_s30  ;;  %p1617_p5 = scmp.lt.s32.totalorder %s1611_s30, %s1611_s30 }
   0xd   :  { %p1618_p6 = por %p1617_p5, %p1616_p4 }
   0xf   :  { %p1619_p7 = pnand %p1618_p6, %p1612_p3 }
  0x11   :  { %1622 = shalt.err (!%p1619_p7)
}
  0x12   :  { %s1688_s7 = smov 256   ;;  %s1689_s8 = smov 16  }
  0x13   :  { %26 = dma.hbm_to_vmem [thread:$0]  %s2412_s0, 2048, %s21_s22, [#allocation4], %s1688_s7, %s1688_s7, %s1689_s8  }
  0x14   :  { %s1690_s11 = smov [#allocation7]   ;;  %s1623_s15 = scalar_lea.hbm %s2416_s4, 6272 }
  0x15   :  { %s38_s12 = sshll.u32 %s1690_s11, 4  ;;  %p1624_p8 = scmp.ne.s32.totalorder %s2416_s4, %s1623_s15  ;;  %s39_s12 = int_to_ptr.vmem [resolvable:$true] %s38_s12 }
  0x16   :  { %p1627_p9 = scmp.lt.u32.totalorder %s1623_s15, %s2416_s4 }
  0x18   :  { %p1629_p10 = pnand %p1627_p9, %p1624_p8 }
  0x1a   :  { %1632 = shalt.err (!%p1629_p10)
}
  0x1b   :  { %s1633_s20 = scalar_lea.vmem %s39_s12, 6272  ;;  %p1638_p12 = scmp.lt.s32.totalorder %s39_s12, %s39_s12 }
  0x1c   :  { %p1634_p11 = scmp.ne.s32.totalorder %s39_s12, %s1633_s20  ;;  %p1639_p13 = scmp.lt.s32.totalorder %s1633_s20, %s1633_s20 }
  0x1e   :  { %p1640_p0 = por %p1639_p13, %p1638_p12 }
  0x20   :  { %p1641_p1 = pnand %p1640_p0, %p1634_p11 }
  0x22   :  { %1644 = shalt.err (!%p1641_p1)
}
  0x23   :  { %s1691_s0 = smov 128   ;;  %s1692_s21 = smov 8  }
  0x24   :  { %44 = dma.hbm_to_vmem [thread:$0]  %s2416_s4, 6272, %s39_s12, [#allocation8], %s1691_s0, %s1691_s0, %s1692_s21  }
  0x25   :  { %s51_s26 = sshll.u32 %s2417_s5, 4  ;;  %s52_s26 = int_to_ptr.vmem [resolvable:$true] %s51_s26 }
  0x26   :  { %s1645_s27 = scalar_lea.vmem %s52_s26, 16  ;;  %p1650_p3 = scmp.lt.s32.totalorder %s52_s26, %s52_s26 }
  0x27   :  { %p1646_p2 = scmp.ne.s32.totalorder %s52_s26, %s1645_s27  ;;  %p1651_p4 = scmp.lt.s32.totalorder %s1645_s27, %s1645_s27 }
  0x29   :  { %p1652_p5 = por %p1651_p4, %p1650_p3 }
  0x2b   :  { %p1653_p6 = pnand %p1652_p5, %p1646_p2 }
  0x2d   :  { %1656 = shalt.err (!%p1653_p6)
}
  0x2e   :  { %s1693_s28 = smov [#allocation9]  }
  0x2f   :  { %54 = dma.vmem_to_smem %s52_s26, 16, %s1693_s28, [#allocation6]  }
  0x30   :  { %1679 = dma.done.wait [#allocation4], 2048  }
  0x31   :  { %1680 = vsyncadd [#allocation4], 4294965248 }
  0x32   :  { %1681 = dma.done.wait [#allocation8], 6272  }
  0x33   :  { %1682 = vsyncadd [#allocation8], 4294961024 }
  0x34   :  { %1683 = dma.done.wait [#allocation6], 16  }
  0x35   :  { %1684 = vsyncadd [#allocation6], 4294967280 }
  0x36   :  { %64 = sfence }
  0x37   :  { %v1811_v0 = vld [vmem:[#allocation3 + $0x40] sm:$0xff]  ;;  %v1813_v1 = vld [vmem:[#allocation3 + $0x48] sm:$0xff]  ;;  %v1821_v5 = vld [vmem:[#allocation3 + $0x50] sm:$0xff]  ;;  %v142_v32 = vlaneseq  ;;  %v1694_v38 = vmov 0   ;;  %vm217_vm0 = vcmask 130112   ;;  %vm224_vm1 = vcmask 195712  }
  0x38   :  { %v1815_v2 = vld [vmem:[#allocation3] sm:$0xff]  ;;  %v93_v3 = vadd.f32 %v1813_v1, %v1811_v0  ;;  %v1819_v4 = vld [vmem:[#allocation3 + $0x8] sm:$0xff]  ;;  %v1823_v6 = vld [vmem:[#allocation3 + $0x58] sm:$0xff]  ;;  %v126_v27 = vmax.f32 %v1811_v0, %v1813_v1  ;;  %1592 = vset.pattern.permute.xlu0 %v1694_v38  ;;  %1591 = vset.pattern.permute.xlu1 %v1694_v38  ;;  %vm231_vm2 = vcmask 261312   ;;  %vm252_vm3 = vcmask 1041409   ;;  %s1529_s29 = sld [smem:[#allocation9 + $0x1]] }
  0x39   :  { %v81_v7 = vadd.f32 %v1819_v4, %v1815_v2  ;;  %v1827_v8 = vld [vmem:[#allocation3 + $0x10] sm:$0xff]  ;;  %v1829_v9 = vld [vmem:[#allocation3 + $0x18] sm:$0xff]  ;;  %v96_v10 = vadd.f32 %v1823_v6, %v1821_v5  ;;  %v1835_v12 = vld [vmem:[#allocation3 + $0x60] sm:$0xff]  ;;  %v114_v25 = vmax.f32 %v1815_v2, %v1819_v4  ;;  %v129_v26 = vmax.f32 %v1821_v5, %v1823_v6  ;;  %s1697_s12 = smov 126   ;;  %s1698_s13 = smov 125  }
  0x3a   :  { %94 = vadd.xlane.f32.xlu1 %v93_v3  ;;  %v84_v11 = vadd.f32 %v1829_v9, %v1827_v8  ;;  %v1837_v13 = vld [vmem:[#allocation3 + $0x68] sm:$0xff]  ;;  %v1839_v14 = vld [vmem:[#allocation3 + $0x20] sm:$0xff]  ;;  %v1847_v18 = vld [vmem:[#allocation3 + $0x70] sm:$0xff]  ;;  %v117_v24 = vmax.f32 %v1827_v8, %v1829_v9  ;;  %v1876_v33 = vshrl.u32 %v142_v32, 7  ;;  %vm255_vm4 = vcmask 254976   ;;  %s1699_s14 = smov 124  }
  0x3b   :  { %82 = vadd.xlane.f32.xlu0 %v81_v7  ;;  %v1841_v15 = vld [vmem:[#allocation3 + $0x28] sm:$0xff]  ;;  %v99_v16 = vadd.f32 %v1837_v13, %v1835_v12  ;;  %v1849_v19 = vld [vmem:[#allocation3 + $0x78] sm:$0xff]  ;;  %v1851_v20 = vld [vmem:[#allocation3 + $0x30] sm:$0xff]  ;;  %v132_v28 = vmax.f32 %v1835_v12, %v1837_v13  ;;  %vm715_vm5 = vcmask 1043459   ;;  %vm720_vm6 = vcmask 1041408   ;;  %s1700_s15 = smov 123  }
  0x3c   :  { %v87_v17 = vadd.f32 %v1841_v15, %v1839_v14  ;;  %v1853_v21 = vld [vmem:[#allocation3 + $0x38] sm:$0xff]  ;;  %v102_v22 = vadd.f32 %v1849_v19, %v1847_v18  ;;  %v120_v29 = vmax.f32 %v1839_v14, %v1841_v15  ;;  %v135_v30 = vmax.f32 %v1847_v18, %v1849_v19  ;;  %v138_v35 = vld [vmem:[%s2413_s1] sm:$0x3]  ;;  %s259_s1 = sld [smem:[#allocation9]]  ;;  %s1701_s16 = smov 122  }
  0x3d   :  { %v90_v23 = vadd.f32 %v1853_v21, %v1851_v20  ;;  %v123_v31 = vmax.f32 %v1851_v20, %v1853_v21  ;;  %v1879_v34 = vsub.s32 0, %v1876_v33  ;;  %v1886_v37 = vsub.s32 1, %v1876_v33  ;;  %s1702_s17 = smov 112   ;;  %s1703_s18 = smov 111  }
  0x3e   :  { %97 = vadd.xlane.f32.xlu1 %v96_v10  ;;  %vm729_vm7 = vcmask 416768   ;;  %vm739_vm8 = vcmask 830464   ;;  %s1704_s19 = smov 110   ;;  %s1705_s20 = smov 109   ;;  %vm756_vm9 = vcmask 1043456   ;;  %vm758_vm10 = vcmask 1039360  }
  0x3f   :  { %85 = vadd.xlane.f32.xlu0 %v84_v11  ;;  %v145_v36 = vrot.slane %v138_v35, %v1879_v34  ;;  %v278_v39 = vrot.slane %v138_v35, %v1886_v37  ;;  %s1706_s0 = smov 108   ;;  %s1707_s21 = smov 107   ;;  %vm772_vm11 = vcmask 1031168   ;;  %vm786_vm12 = vcmask 1022976  }
  0x40   :  { %s1708_s22 = smov 106   ;;  %s1709_s23 = smov 96   ;;  %vm800_vm13 = vcmask 1014784   ;;  %vm814_vm14 = vcmask 1006592   ;;  %vm828_vm15 = vcmask 998400  }
  0x41   :  { %s1710_s24 = smov 95   ;;  %s1711_s25 = smov 94  }
  0x42   :  { %100 = vadd.xlane.f32.xlu1 %v99_v16  ;;  %s1712_s26 = smov 93   ;;  %s1713_s27 = smov 92  }
  0x43   :  { %88 = vadd.xlane.f32.xlu0 %v87_v17  ;;  %s1714_s28 = smov 91   ;;  %s1715_s4 = smov 90  }
  0x44   :  { %s1716_s5 = smov 80   ;;  %s1719_s30 = smov 77  }
  0x45   :  { %s1720_s9 = smov 76   ;;  %s1721_s10 = smov 75  }
  0x46   :  { %103 = vadd.xlane.f32.xlu1 %v102_v22  ;;  %s1722_s11 = smov 74  }
  0x47   :  { %91 = vadd.xlane.f32.xlu0 %v90_v23 }
  0x4a   :  { %118 = vmax.xlane.f32.xlu1 %v117_v24 }
  0x4b   :  { %115 = vmax.xlane.f32.xlu0 %v114_v25 }
  0x4e   :  { %130 = vmax.xlane.f32.xlu1 %v129_v26 }
  0x4f   :  { %127 = vmax.xlane.f32.xlu0 %v126_v27 }
  0x52   :  { %133 = vmax.xlane.f32.xlu1 %v132_v28 }
  0x53   :  { %121 = vmax.xlane.f32.xlu0 %v120_v29 }
  0x56   :  { %136 = vmax.xlane.f32.xlu1 %v135_v30 }
  0x57   :  { %124 = vmax.xlane.f32.xlu0 %v123_v31 }
  0x67   :  { %152 = vbcast.lane.b32.xlu1 %v145_v36, 264 }
  0x6b   :  { %156 = vbcast.lane.b32.xlu1 %v145_v36, 272 }
  0x6d   :  { %148 = vbcast.lane.b32.xlu0 %v145_v36, 256 }
  0x6f   :  { %160 = vbcast.lane.b32.xlu1 %v145_v36, 280 }
  0x71   :  { %281 = vbcast.lane.b32.xlu0 %v278_v39, 256 }
  0x73   :  { %285 = vbcast.lane.b32.xlu1 %v278_v39, 264 }
  0x75   :  { %289 = vbcast.lane.b32.xlu0 %v278_v39, 272 }
  0x77   :  { %293 = vbcast.lane.b32.xlu1 %v278_v39, 280 }
  0xc7   :  { %v95_v40 = vpop.xlane.xlu1 %94 }
  0xc8   :  { %v83_v41 = vpop.xlane.xlu0 %82  ;;  %v110_v38 = vmul.f32 0.00390625, %v95_v40 }
  0xc9   :  { %v106_v29 = vmul.f32 0.00390625, %v83_v41 }
  0xcb   :  { %v98_v42 = vpop.xlane.xlu1 %97 }
  0xcc   :  { %v86_v43 = vpop.xlane.xlu0 %85  ;;  %v111_v36 = vmul.f32 0.00390625, %v98_v42 }
  0xcd   :  { %v107_v30 = vmul.f32 0.00390625, %v86_v43 }
  0xcf   :  { %v101_v44 = vpop.xlane.xlu1 %100 }
  0xd0   :  { %v89_v45 = vpop.xlane.xlu0 %88 }
  0xd3   :  { %v104_v46 = vpop.xlane.xlu1 %103 }
  0xd4   :  { %v92_v47 = vpop.xlane.xlu0 %91 }
  0xd5   :  { %v109_v41 = vmul.f32 0.00390625, %v92_v47 }
  0xd7   :  { %v119_v48 = vpop.xlane.xlu1 %118 }
  0xd8   :  { %v116_v49 = vpop.xlane.xlu0 %115 }
  0xdb   :  { %v131_v50 = vpop.xlane.xlu1 %130 }
  0xdc   :  { %v128_v51 = vpop.xlane.xlu0 %127 }
  0xdf   :  { %v134_v52 = vpop.xlane.xlu1 %133 }
  0xe0   :  { %v122_v53 = vpop.xlane.xlu0 %121 }
  0xe3   :  { %v1889_v54 = vpop.xlane.xlu1 %136 }
  0xe4   :  { %v1891_v55 = vpop.xlane.xlu0 %124 }
  0xe7   :  { %v153_v56 = vpop.permute.xlu1 %152 }
  0xe8   :  { %v149_v57 = vpop.permute.xlu0 %148  ;;  %v393_v58 = vmul.f32 %v153_v56, %v119_v48  ;;  %v397_v61 = vmul.f32 %v153_v56, %v131_v50  ;;  %v167_v35 = vmul.f32 %v153_v56, %v107_v30  ;;  %v171_v39 = vmul.f32 %v153_v56, %v111_v36 }
  0xe9   :  { %v392_v59 = vmul.f32 %v149_v57, %v116_v49  ;;  %v396_v62 = vmul.f32 %v149_v57, %v128_v51  ;;  %v166_v31 = vmul.f32 %v149_v57, %v106_v29 }
  0xea   :  { %412 = vperm.xlu0 %1592, %v393_v58  }
  0xeb   :  { %409 = vperm.xlu1 %1591, %v392_v59   ;;  %v157_v60 = vpop.permute.xlu1 %156 }
  0xec   :  { %v398_v3 = vmul.f32 %v157_v60, %v134_v52  ;;  %v394_v7 = vmul.f32 %v157_v60, %v122_v53  ;;  %v282_v17 = vpop.permute.xlu0 %281 }
  0xed   :  { %v479_v23 = vmul.f32 %v282_v17, %v116_v49  ;;  %v483_v26 = vmul.f32 %v282_v17, %v128_v51  ;;  %v112_v49 = vmul.f32 0.00390625, %v101_v44  ;;  %v299_v59 = vmul.f32 %v282_v17, %v106_v29 }
  0xee   :  { %424 = vperm.xlu0 %1592, %v397_v61   ;;  %v303_v56 = vmul.f32 %v282_v17, %v110_v38 }
  0xef   :  { %421 = vperm.xlu1 %1591, %v396_v62   ;;  %v161_v63 = vpop.permute.xlu1 %160  ;;  %v172_v51 = vmul.f32 %v157_v60, %v112_v49  ;;  %v207_v62 = vand.u32 127, %v142_v32 }
  0xf0   :  { %v399_v10 = vmul.f32 %v161_v63, %v1889_v54  ;;  %v395_v16 = vmul.f32 %v161_v63, %v1891_v55  ;;  %v290_v25 = vpop.permute.xlu0 %289 }
  0xf1   :  { %v485_v27 = vmul.f32 %v290_v25, %v134_v52  ;;  %v481_v28 = vmul.f32 %v290_v25, %v122_v53  ;;  %v113_v52 = vmul.f32 0.00390625, %v104_v46  ;;  %v169_v53 = vmul.f32 %v161_v63, %v109_v41 }
  0xf2   :  { %427 = vperm.xlu0 %1592, %v398_v3   ;;  %v305_v44 = vmul.f32 %v290_v25, %v112_v49  ;;  %v226_v17 = vadd.s32 4294967272, %v207_v62 }
  0xf3   :  { %415 = vperm.xlu1 %1591, %v394_v7   ;;  %v286_v11 = vpop.permute.xlu1 %285  ;;  %v173_v43 = vmul.f32 %v161_v63, %v113_v52  ;;  %v212_v7 = vadd.s32 4294967288, %v207_v62 }
  0xf4   :  { %v480_v22 = vmul.f32 %v286_v11, %v119_v48  ;;  %v484_v24 = vmul.f32 %v286_v11, %v131_v50  ;;  %v170_v48 = vmul.f32 %v149_v57, %v110_v38  ;;  %v108_v50 = vmul.f32 0.00390625, %v89_v45 }
  0xf5   :  { %v300_v42 = vmul.f32 %v286_v11, %v107_v30  ;;  %v304_v40 = vmul.f32 %v286_v11, %v111_v36 }
  0xf6   :  { %430 = vperm.xlu0 %1592, %v399_v10   ;;  %v168_v58 = vmul.f32 %v157_v60, %v108_v50  ;;  %v301_v57 = vmul.f32 %v290_v25, %v108_v50  ;;  %v219_v10 = vadd.s32 4294967280, %v207_v62 }
  0xf7   :  { %418 = vperm.xlu1 %1591, %v395_v16   ;;  %v294_v45 = vpop.permute.xlu1 %293 }
  0xf8   :  { %v306_v46 = vmul.f32 %v294_v45, %v113_v52  ;;  %v302_v47 = vmul.f32 %v294_v45, %v109_v41  ;;  %v486_v60 = vmul.f32 %v294_v45, %v1889_v54  ;;  %v482_v61 = vmul.f32 %v294_v45, %v1891_v55 }
  0xf9   :  { %v1905_v54 = vsub.s32 %v219_v10, %v1876_v33 }
  0xfa   :  { %499 = vperm.xlu0 %1592, %v480_v22   ;;  %v1899_v22 = vsub.s32 %v207_v62, %v1876_v33 }
  0xfb   :  { %496 = vperm.xlu1 %1591, %v479_v23   ;;  %v1902_v23 = vsub.s32 %v212_v7, %v1876_v33 }
  0xfe   :  { %511 = vperm.xlu0 %1592, %v484_v24  }
  0xff   :  { %508 = vperm.xlu1 %1591, %v483_v26   ;;  %v1910_v26 = vsub.s32 %v226_v17, %v1876_v33 }
 0x102   :  { %514 = vperm.xlu0 %1592, %v485_v27  }
 0x103   :  { %502 = vperm.xlu1 %1591, %v481_v28  }
 0x106   :  { %183 = vperm.xlu0 %1592, %v166_v31  }
 0x107   :  { %186 = vperm.xlu1 %1591, %v167_v35  }
 0x10a   :  { %198 = vperm.xlu0 %1592, %v171_v39  }
 0x10b   :  { %195 = vperm.xlu1 %1591, %v170_v48  }
 0x10e   :  { %201 = vperm.xlu0 %1592, %v172_v51  }
 0x10f   :  { %189 = vperm.xlu1 %1591, %v168_v58  }
 0x112   :  { %204 = vperm.xlu0 %1592, %v173_v43  }
 0x113   :  { %192 = vperm.xlu1 %1591, %v169_v53  }
 0x116   :  { %319 = vperm.xlu0 %1592, %v300_v42  }
 0x117   :  { %316 = vperm.xlu1 %1591, %v299_v59  }
 0x11a   :  { %331 = vperm.xlu0 %1592, %v304_v40  }
 0x11b   :  { %328 = vperm.xlu1 %1591, %v303_v56  }
 0x11e   :  { %334 = vperm.xlu0 %1592, %v305_v44  }
 0x11f   :  { %322 = vperm.xlu1 %1591, %v301_v57  }
 0x122   :  { %337 = vperm.xlu0 %1592, %v306_v46  }
 0x123   :  { %325 = vperm.xlu1 %1591, %v302_v47  }
 0x126   :  { %517 = vperm.xlu0 %1592, %v486_v60  }
 0x127   :  { %505 = vperm.xlu1 %1591, %v482_v61  }
 0x169   :  { %v413_v63 = vpop.permute.xlu0 %412 }
 0x16a   :  { %v410_v3 = vpop.permute.xlu1 %409  ;;  %v439_v28 = vrot.slane %v413_v63, %v1902_v23 }
 0x16b   :  { %v435_v27 = vrot.slane %v410_v3, %v1899_v22 }
 0x16d   :  { %v425_v11 = vpop.permute.xlu0 %424  ;;  %v440_v39 = vsel %vm217_vm0, %v439_v28, %v435_v27 }
 0x16e   :  { %v422_v16 = vpop.permute.xlu1 %421  ;;  %v458_v32 = vrot.slane %v425_v11, %v1902_v23 }
 0x16f   :  { %v454_v24 = vrot.slane %v422_v16, %v1899_v22 }
 0x171   :  { %v428_v55 = vpop.permute.xlu0 %427  ;;  %v459_v35 = vsel %vm217_vm0, %v458_v32, %v454_v24 }
 0x172   :  { %v416_v25 = vpop.permute.xlu1 %415  ;;  %v463_v29 = vrot.slane %v428_v55, %v1905_v54 }
 0x173   :  { %v444_v30 = vrot.slane %v416_v25, %v1905_v54 }
 0x174   :  { %v464_v49 = vsel %vm224_vm1, %v463_v29, %v459_v35 }
 0x175   :  { %v431_v31 = vpop.permute.xlu0 %430  ;;  %v445_v50 = vsel %vm224_vm1, %v444_v30, %v440_v39 }
 0x176   :  { %v419_v36 = vpop.permute.xlu1 %418  ;;  %v468_v38 = vrot.slane %v431_v31, %v1910_v26 }
 0x177   :  { %v449_v48 = vrot.slane %v419_v36, %v1910_v26 }
 0x178   :  { %v469_v51 = vsel %vm231_vm2, %v468_v38, %v464_v49 }
 0x179   :  { %v1923_v58 = vpop.permute.xlu0 %499  ;;  %v450_v52 = vsel %vm231_vm2, %v449_v48, %v445_v50 }
 0x17a   :  { %v1926_v41 = vpop.permute.xlu1 %496  ;;  %v470_v43 = vsel %vm252_vm3, %v469_v51, %v450_v52 }
 0x17b   :  { %v472_v53 = vsel %vm255_vm4, %v470_v43, 0.0 }
 0x17c   :  { %473 = vadd.xlane.f32.xlu0 %v472_v53 }
 0x17d   :  { %v512_v42 = vpop.permute.xlu0 %511 }
 0x17e   :  { %v509_v59 = vpop.permute.xlu1 %508 }
 0x181   :  { %v1930_v40 = vpop.permute.xlu0 %514 }
 0x182   :  { %v1932_v56 = vpop.permute.xlu1 %502 }
 0x185   :  { %v184_v44 = vpop.permute.xlu0 %183 }
 0x186   :  { %v187_v45 = vpop.permute.xlu1 %186  ;;  %v211_v3 = vrot.slane %v184_v44, %v1899_v22 }
 0x187   :  { %v216_v63 = vrot.slane %v187_v45, %v1902_v23  ;;  %v522_v45 = vrot.slane %v1926_v41, %v1899_v22 }
 0x189   :  { %v199_v57 = vpop.permute.xlu0 %198  ;;  %v218_v24 = vsel %vm217_vm0, %v216_v63, %v211_v3  ;;  %v550_v3 = vrot.slane %v1930_v40, %v1905_v54 }
 0x18a   :  { %v196_v46 = vpop.permute.xlu1 %195  ;;  %v240_v61 = vrot.slane %v199_v57, %v1902_v23  ;;  %v526_v57 = vrot.slane %v1923_v58, %v1902_v23  ;;  %v531_v58 = vrot.slane %v1932_v56, %v1905_v54 }
 0x18b   :  { %v236_v60 = vrot.slane %v196_v46, %v1899_v22 }
 0x18d   :  { %v202_v47 = vpop.permute.xlu0 %201  ;;  %v241_v16 = vsel %vm217_vm0, %v240_v61, %v236_v60  ;;  %v545_v60 = vrot.slane %v512_v42, %v1902_v23 }
 0x18e   :  { %v190_v62 = vpop.permute.xlu1 %189  ;;  %v245_v7 = vrot.slane %v202_v47, %v1905_v54  ;;  %v541_v47 = vrot.slane %v509_v59, %v1899_v22 }
 0x18f   :  { %v223_v10 = vrot.slane %v190_v62, %v1905_v54 }
 0x190   :  { %v246_v25 = vsel %vm224_vm1, %v245_v7, %v241_v16 }
 0x191   :  { %v205_v11 = vpop.permute.xlu0 %204  ;;  %v225_v27 = vsel %vm224_vm1, %v223_v10, %v218_v24 }
 0x192   :  { %v193_v17 = vpop.permute.xlu1 %192  ;;  %v250_v55 = vrot.slane %v205_v11, %v1910_v26  ;;  %v546_v11 = vsel %vm217_vm0, %v545_v60, %v541_v47 }
 0x193   :  { %v230_v32 = vrot.slane %v193_v17, %v1910_v26  ;;  %v551_v56 = vsel %vm224_vm1, %v550_v3, %v546_v11 }
 0x194   :  { %v251_v28 = vsel %vm231_vm2, %v250_v55, %v246_v25  ;;  %v527_v55 = vsel %vm217_vm0, %v526_v57, %v522_v45 }
 0x195   :  { %v320_v29 = vpop.permute.xlu0 %319  ;;  %v232_v30 = vsel %vm231_vm2, %v230_v32, %v225_v27  ;;  %v532_v32 = vsel %vm224_vm1, %v531_v58, %v527_v55 }
 0x196   :  { %v317_v31 = vpop.permute.xlu1 %316  ;;  %v253_v35 = vsel %vm252_vm3, %v251_v28, %v232_v30  ;;  %v346_v43 = vrot.slane %v320_v29, %v1902_v23 }
 0x197   :  { %v256_v36 = vsel %vm255_vm4, %v253_v35, 0.0  ;;  %v342_v52 = vrot.slane %v317_v31, %v1899_v22  ;;  %v140_v35 = vld [vmem:[%s2415_s3] sm:$0x1]  ;;  %s1696_s3 = smov 127  }
 0x198   :  { %257 = vadd.xlane.f32.xlu1 %v256_v36  ;;  %v139_v36 = vld [vmem:[%s2414_s2] sm:$0x3]  ;;  %s1695_s2 = smov 51  }
 0x199   :  { %v332_v38 = vpop.permute.xlu0 %331  ;;  %v347_v7 = vsel %vm217_vm0, %v346_v43, %v342_v52 }
 0x19a   :  { %v329_v39 = vpop.permute.xlu1 %328  ;;  %v365_v50 = vrot.slane %v332_v38, %v1902_v23 }
 0x19b   :  { %v361_v49 = vrot.slane %v329_v39, %v1899_v22  ;;  %v141_v39 = vmul.f32 2.0, %v140_v35 }
 0x19d   :  { %v335_v48 = vpop.permute.xlu0 %334  ;;  %v366_v61 = vsel %vm217_vm0, %v365_v50, %v361_v49  ;;  %v383_v49 = vstv %s1529_s29  ;;  %v266_v50 = vrot.slane %v139_v36, %v1879_v34  ;;  %v272_v43 = vrot.slane %v141_v39, %v1879_v34  ;;  %s1718_s29 = smov 78  }
 0x19e   :  { %v323_v51 = vpop.permute.xlu1 %322  ;;  %v370_v53 = vrot.slane %v335_v48, %v1905_v54  ;;  %vm842_vm0 = vcmask 916480  }
 0x19f   :  { %v351_v44 = vrot.slane %v323_v51, %v1905_v54 }
 0x1a0   :  { %v371_v10 = vsel %vm224_vm1, %v370_v53, %v366_v61 }
 0x1a1   :  { %v338_v46 = vpop.permute.xlu0 %337  ;;  %v352_v22 = vsel %vm224_vm1, %v351_v44, %v347_v7  ;;  %v389_v44 = vrot.slane %v139_v36, %v1886_v37  ;;  %vm856_vm1 = vcmask 908288  }
 0x1a2   :  { %v326_v62 = vpop.permute.xlu1 %325  ;;  %v375_v63 = vrot.slane %v338_v46, %v1910_v26 }
 0x1a3   :  { %v356_v41 = vrot.slane %v326_v62, %v1910_v26 }
 0x1a4   :  { %v376_v23 = vsel %vm231_vm2, %v375_v63, %v371_v10 }
 0x1a5   :  { %v518_v42 = vpop.permute.xlu0 %517  ;;  %v357_v59 = vsel %vm231_vm2, %v356_v41, %v352_v22 }
 0x1a6   :  { %v506_v16 = vpop.permute.xlu1 %505  ;;  %v555_v40 = vrot.slane %v518_v42, %v1910_v26  ;;  %v377_v17 = vsel %vm252_vm3, %v376_v23, %v357_v59 }
 0x1a7   :  { %v536_v24 = vrot.slane %v506_v16, %v1910_v26  ;;  %v379_v54 = vsel %vm255_vm4, %v377_v17, 0.0  ;;  %v260_v26 = vstv %s259_s1  ;;  %s1717_s1 = smov 79  }
 0x1a8   :  { %380 = vadd.xlane.f32.xlu0 %v379_v54  ;;  %v556_v25 = vsel %vm231_vm2, %v555_v40, %v551_v56 }
 0x1a9   :  { %v537_v27 = vsel %vm231_vm2, %v536_v24, %v532_v32  ;;  %vm870_vm2 = vcmask 900096  }
 0x1aa   :  { %v557_v28 = vsel %vm252_vm3, %v556_v25, %v537_v27 }
 0x1ab   :  { %v559_v29 = vsel %vm255_vm4, %v557_v28, 0.0  ;;  %vm898_vm4 = vcmask 883712  }
 0x1ac   :  { %560 = vadd.xlane.f32.xlu0 %v559_v29 }
 0x209   :  { %v474_v38 = vpop.xlane.xlu0 %473 }
 0x20a   :  { %v475_v51 = vadd.f32 %v474_v38, %v260_v26 }
 0x20c   :  { %v476_v57 = vmax.f32 %v475_v51, 0.0 }
 0x20e   :  { %v477_v63 = vmul.f32 %v476_v57, %v266_v50 }
 0x225   :  { %v258_v30 = vpop.xlane.xlu1 %257 }
 0x226   :  { %v261_v31 = vadd.f32 %v260_v26, %v258_v30 }
 0x228   :  { %v262_v48 = vmax.f32 %v261_v31, 0.0 }
 0x22a   :  { %v267_v53 = vmul.f32 %v266_v50, %v262_v48 }
 0x22c   :  { %v274_v60 = vadd.f32 %v272_v43, %v267_v53 }
 0x235   :  { %v381_v52 = vpop.xlane.xlu0 %380 }
 0x236   :  { %v384_v45 = vadd.f32 %v383_v49, %v381_v52 }
 0x238   :  { %v385_v46 = vmax.f32 %v384_v45, 0.0 }
 0x239   :  { %v561_v47 = vpop.xlane.xlu0 %560 }
 0x23a   :  { %v390_v61 = vmul.f32 %v389_v44, %v385_v46  ;;  %v562_v62 = vadd.f32 %v561_v47, %v383_v49 }
 0x23c   :  { %v391_v3 = vadd.f32 %v390_v61, %v274_v60  ;;  %v563_v7 = vmax.f32 %v562_v62, 0.0 }
 0x23e   :  { %v478_v41 = vadd.f32 %v477_v63, %v391_v3  ;;  %v564_v10 = vmul.f32 %v563_v7, %v389_v44 }
 0x240   :  { %v565_v58 = vadd.f32 %v564_v10, %v478_v41 }
 0x242   :  { %v566_v22 = vsub.f32 0.0, %v565_v58 }
 0x244   :  { %v567_v23 = vmul.f32 1.442695, %v566_v22 }
 0x246   :  { %1593 = vpow2.f32 %v567_v23 }
 0x250   :  { %v1594_v42 = vpop.eup %1593 }
 0x251   :  { %v569_v59 = vadd.f32 1.0, %v1594_v42 }
 0x253   :  { %1595 = vrcp.f32 %v569_v59 }
 0x25d   :  { %v1596_v11 = vpop.eup %1595 }
 0x25e   :  { %v575_v16 = vrot.slane %v1596_v11, %v1879_v34  ;;  %v594_v40 = vrot.slane %v1596_v11, %v1886_v37 }
 0x260   :  { %581 = vbcast.lane.b32.xlu0 %v575_v16, 264  ;;  %577 = vbcast.lane.b32.xlu1 %v575_v16, 256 }
 0x264   :  { %604 = vbcast.lane.b32.xlu0 %v594_v40, 272  ;;  %596 = vbcast.lane.b32.xlu1 %v594_v40, 256 }
 0x268   :  { %608 = vbcast.lane.b32.xlu0 %v594_v40, 280  ;;  %600 = vbcast.lane.b32.xlu1 %v594_v40, 264 }
 0x26c   :  { %585 = vbcast.lane.b32.xlu1 %v575_v16, 272 }
 0x270   :  { %589 = vbcast.lane.b32.xlu1 %v575_v16, 280 }
 0x2d2   :  { %v582_v17 = vpop.permute.xlu0 %581  ;;  %v578_v55 = vpop.permute.xlu1 %577 }
 0x2d3   :  { %v1998_v56 = vmul.f32 %v582_v17, %v1827_v8  ;;  %v2001_v32 = vmul.f32 %v582_v17, %v1829_v9  ;;  %v2016_v8 = vmul.f32 %v578_v55, %v1815_v2  ;;  %v2019_v9 = vmul.f32 %v578_v55, %v1819_v4 }
 0x2d5   :  { %v626_v48 = vmax.f32 %v2016_v8, %v1998_v56  ;;  %v635_v49 = vmax.f32 %v2019_v9, %v2001_v32  ;;  %v662_v53 = vadd.f32 %v1998_v56, %v2016_v8  ;;  %v671_v44 = vadd.f32 %v2001_v32, %v2019_v9 }
 0x2d6   :  { %v605_v24 = vpop.permute.xlu0 %604  ;;  %v597_v54 = vpop.permute.xlu1 %596 }
 0x2d7   :  { %v2004_v27 = vmul.f32 %v597_v54, %v1811_v0  ;;  %v2007_v28 = vmul.f32 %v597_v54, %v1813_v1  ;;  %v2022_v31 = vmul.f32 %v605_v24, %v1835_v12  ;;  %v2025_v0 = vmul.f32 %v605_v24, %v1837_v13 }
 0x2da   :  { %v601_v25 = vpop.permute.xlu1 %600  ;;  %v609_v29 = vpop.permute.xlu0 %608 }
 0x2db   :  { %v2010_v30 = vmul.f32 %v601_v25, %v1821_v5  ;;  %v2013_v26 = vmul.f32 %v601_v25, %v1823_v6  ;;  %v2036_v4 = vmul.f32 %v609_v29, %v1847_v18  ;;  %v2039_v12 = vmul.f32 %v609_v29, %v1849_v19 }
 0x2dd   :  { %v644_v1 = vmax.f32 %v2004_v27, %v2010_v30  ;;  %v653_v5 = vmax.f32 %v2007_v28, %v2013_v26  ;;  %v680_v6 = vadd.f32 %v2010_v30, %v2004_v27  ;;  %v689_v2 = vadd.f32 %v2013_v26, %v2007_v28  ;;  %2420 = vst [vmem:[#allocation15_spill] sm:$0xff] %v2039_v12 }
 0x2de   :  { %v586_v13 = vpop.permute.xlu1 %585 }
 0x2df   :  { %v645_v35 = vmax.f32 %v644_v1, %v2022_v31  ;;  %v654_v36 = vmax.f32 %v653_v5, %v2025_v0  ;;  %v681_v38 = vadd.f32 %v680_v6, %v2022_v31  ;;  %v690_v39 = vadd.f32 %v689_v2, %v2025_v0 }
 0x2e0   :  { %v2050_v18 = vmul.f32 %v586_v13, %v1839_v14  ;;  %v2053_v19 = vmul.f32 %v586_v13, %v1841_v15 }
 0x2e1   :  { %v646_v50 = vmax.f32 %v645_v35, %v2036_v4  ;;  %v655_v51 = vmax.f32 %v654_v36, %v2039_v12  ;;  %v682_v52 = vadd.f32 %v681_v38, %v2036_v4  ;;  %v691_v43 = vadd.f32 %v690_v39, %v2039_v12 }
 0x2e2   :  { %v627_v14 = vmax.f32 %v626_v48, %v2050_v18  ;;  %v636_v45 = vmax.f32 %v635_v49, %v2053_v19  ;;  %v590_v15 = vpop.permute.xlu1 %589  ;;  %v663_v61 = vadd.f32 %v662_v53, %v2050_v18  ;;  %v672_v62 = vadd.f32 %v671_v44, %v2053_v19 }
 0x2e3   :  { %v647_v57 = vrot.slane %v646_v50, 4  ;;  %v656_v46 = vrot.slane %v655_v51, 4  ;;  %v683_v47 = vrot.slane %v682_v52, 4  ;;  %v692_v60 = vrot.slane %v691_v43, 4 }
 0x2e4   :  { %v2068_v63 = vmul.f32 %v590_v15, %v1851_v20  ;;  %v2071_v3 = vmul.f32 %v590_v15, %v1853_v21 }
 0x2e5   :  { %v657_v7 = vmax.f32 %v655_v51, %v656_v46  ;;  %v693_v41 = vadd.f32 %v692_v60, %v691_v43  ;;  %v648_v10 = vmax.f32 %v646_v50, %v647_v57  ;;  %v684_v58 = vadd.f32 %v683_v47, %v682_v52 }
 0x2e6   :  { %v628_v22 = vmax.f32 %v627_v14, %v2068_v63  ;;  %v637_v23 = vmax.f32 %v636_v45, %v2071_v3  ;;  %v664_v42 = vadd.f32 %v663_v61, %v2068_v63  ;;  %v673_v59 = vadd.f32 %v672_v62, %v2071_v3 }
 0x2e7   :  { %v658_v11 = vrot.slane %v657_v7, 2  ;;  %v694_v16 = vrot.slane %v693_v41, 2  ;;  %v649_v40 = vrot.slane %v648_v10, 2  ;;  %v685_v20 = vrot.slane %v684_v58, 2 }
 0x2e8   :  { %v629_v17 = vrot.slane %v628_v22, 4  ;;  %v638_v55 = vrot.slane %v637_v23, 4  ;;  %v665_v21 = vrot.slane %v664_v42, 4  ;;  %v674_v24 = vrot.slane %v673_v59, 4 }
 0x2e9   :  { %v695_v54 = vadd.f32 %v694_v16, %v693_v41  ;;  %v686_v25 = vadd.f32 %v685_v20, %v684_v58  ;;  %v659_v2 = vmax.f32 %v657_v7, %v658_v11  ;;  %v650_v35 = vmax.f32 %v648_v10, %v649_v40 }
 0x2ea   :  { %v630_v29 = vmax.f32 %v628_v22, %v629_v17  ;;  %v639_v1 = vmax.f32 %v637_v23, %v638_v55  ;;  %v666_v5 = vadd.f32 %v665_v21, %v664_v42  ;;  %v675_v6 = vadd.f32 %v674_v24, %v673_v59 }
 0x2eb   :  { %v696_v13 = vrot.slane %v695_v54, 1  ;;  %v687_v36 = vrot.slane %v686_v25, 1  ;;  %v660_v53 = vrot.slane %v659_v2, 1  ;;  %v651_v14 = vrot.slane %v650_v35, 1 }
 0x2ec   :  { %v631_v38 = vrot.slane %v630_v29, 2  ;;  %v640_v39 = vrot.slane %v639_v1, 2  ;;  %v667_v48 = vrot.slane %v666_v5, 2  ;;  %v676_v49 = vrot.slane %v675_v6, 2 }
 0x2ed   :  { %v697_v44 = vadd.f32 %v696_v13, %v695_v54  ;;  %v688_v45 = vadd.f32 %v687_v36, %v686_v25  ;;  %v661_v41 = vmax.f32 %v659_v2, %v660_v53  ;;  %v652_v10 = vmax.f32 %v650_v35, %v651_v14  ;;  %v747_v36 = vld [vmem:[#allocation7 + $0x8] sm:$0xff]  ;;  %v764_v53 = vld [vmem:[#allocation7 + $0x10] sm:$0xff] }
 0x2ee   :  { %v641_v50 = vmax.f32 %v639_v1, %v640_v39  ;;  %v677_v51 = vadd.f32 %v676_v49, %v675_v6  ;;  %v632_v52 = vmax.f32 %v630_v29, %v631_v38  ;;  %v668_v43 = vadd.f32 %v667_v48, %v666_v5  ;;  %v742_v48 = vld [vmem:[#allocation7] sm:$0xff] }
 0x2ef   :  { %v702_v22 = vmul.f32 0.03125, %v697_v44  ;;  %v701_v42 = vmul.f32 0.03125, %v688_v45 }
 0x2f0   :  { %v642_v15 = vrot.slane %v641_v50, 1  ;;  %v678_v57 = vrot.slane %v677_v51, 1  ;;  %v633_v46 = vrot.slane %v632_v52, 1  ;;  %v669_v47 = vrot.slane %v668_v43, 1 }
 0x2f2   :  { %v643_v60 = vmax.f32 %v641_v50, %v642_v15  ;;  %v679_v61 = vadd.f32 %v678_v57, %v677_v51  ;;  %v634_v62 = vmax.f32 %v632_v52, %v633_v46  ;;  %v670_v7 = vadd.f32 %v669_v47, %v668_v43 }
 0x2f4   :  { %v700_v58 = vmul.f32 0.03125, %v679_v61  ;;  %v699_v23 = vmul.f32 0.03125, %v670_v7  ;;  %v708_v59 = vsel %vm252_vm3, %v661_v41, %v643_v60  ;;  %v707_v16 = vsel %vm252_vm3, %v652_v10, %v634_v62  ;;  %v778_v62 = vld [vmem:[#allocation7 + $0x18] sm:$0xff] }
 0x2f5   :  { %vm884_vm3 = vcmask 891904  }
 0x2f6   :  { %v717_v11 = vsel %vm715_vm5, %v702_v22, %v700_v58  ;;  %v716_v40 = vsel %vm715_vm5, %v701_v42, %v699_v23  ;;  %vm912_vm5 = vcmask 875520  }
 0x2f7   :  { %v722_v20 = vsel %vm720_vm6, %v708_v59, %v717_v11  ;;  %v721_v17 = vsel %vm720_vm6, %v707_v16, %v716_v40  ;;  %v792_v11 = vld [vmem:[#allocation7 + $0x20] sm:$0xff]  ;;  %vm926_vm6 = vcmask 867328  }
 0x2f8   :  { %727 = vrot.lane.b32.xlu0 %v722_v20, %s1695_s2  ;;  %725 = vrot.lane.b32.xlu1 %v721_v17, %s1695_s2  ;;  %s1723_s2 = smov 64  }
 0x36a   :  { %v728_v55 = vpop.permute.xlu0 %727  ;;  %v726_v21 = vpop.permute.xlu1 %725 }
 0x36b   :  { %v734_v24 = vsel %vm729_vm7, %v728_v55, 0.0  ;;  %v730_v54 = vsel %vm729_vm7, %v726_v21, %v728_v55  ;;  %v733_v25 = vsel %vm729_vm7, 0.0, %v726_v21  ;;  %vm940_vm7 = vcmask 785408  }
 0x36c   :  { %740 = vst.msk [vmem:[#allocation2 + $0x8] sm:$0xf] %vm739_vm8, %v734_v24  ;;  %v2079_v29 = vcombine.low %v733_v25, %v730_v54  ;;  %v806_v25 = vld [vmem:[#allocation7 + $0x28] sm:$0xff]  ;;  %vm954_vm8 = vcmask 777216  }
 0x36e   :  { %750 = vrot.lane.b32.xlu1 %v2079_v29, %s1696_s3  ;;  %v743_v14 = vmul.f32 %v742_v48, %v2079_v29  ;;  %v820_v48 = vld [vmem:[#allocation7 + $0x30] sm:$0xff] }
 0x372   :  { %765 = vrot.lane.b32.xlu1 %v2079_v29, %s1697_s12 }
 0x373   :  { %v2083_v1 = vld [vmem:[#allocation2 + $0x8] sm:$0xf] }
 0x374   :  { %752 = vrot.lane.b32.xlu0 %v2083_v1, %s1696_s3  ;;  %s1724_s3 = smov 63  }
 0x376   :  { %779 = vrot.lane.b32.xlu1 %v2079_v29, %s1698_s13 }
 0x378   :  { %767 = vrot.lane.b32.xlu0 %v2083_v1, %s1697_s12  ;;  %s1725_s12 = smov 62  }
 0x37a   :  { %793 = vrot.lane.b32.xlu1 %v2079_v29, %s1699_s14 }
 0x37c   :  { %781 = vrot.lane.b32.xlu0 %v2083_v1, %s1698_s13  ;;  %s1726_s13 = smov 61  }
 0x37e   :  { %807 = vrot.lane.b32.xlu1 %v2079_v29, %s1700_s15 }
 0x380   :  { %795 = vrot.lane.b32.xlu0 %v2083_v1, %s1699_s14  ;;  %s1727_s14 = smov 60  }
 0x382   :  { %821 = vrot.lane.b32.xlu1 %v2079_v29, %s1701_s16 }
 0x384   :  { %809 = vrot.lane.b32.xlu0 %v2083_v1, %s1700_s15  ;;  %s1728_s15 = smov 59  }
 0x386   :  { %835 = vrot.lane.b32.xlu1 %v2079_v29, %s1702_s17 }
 0x388   :  { %823 = vrot.lane.b32.xlu0 %v2083_v1, %s1701_s16  ;;  %s1729_s16 = smov 58  }
 0x38a   :  { %849 = vrot.lane.b32.xlu1 %v2079_v29, %s1703_s18 }
 0x38c   :  { %837 = vrot.lane.b32.xlu0 %v2083_v1, %s1702_s17  ;;  %s1730_s17 = smov 48  }
 0x38e   :  { %863 = vrot.lane.b32.xlu1 %v2079_v29, %s1704_s19 }
 0x390   :  { %851 = vrot.lane.b32.xlu0 %v2083_v1, %s1703_s18  ;;  %s1731_s18 = smov 47  }
 0x392   :  { %877 = vrot.lane.b32.xlu1 %v2079_v29, %s1705_s20 }
 0x394   :  { %865 = vrot.lane.b32.xlu0 %v2083_v1, %s1704_s19  ;;  %s1732_s19 = smov 46  }
 0x396   :  { %891 = vrot.lane.b32.xlu1 %v2079_v29, %s1706_s0 }
 0x398   :  { %879 = vrot.lane.b32.xlu0 %v2083_v1, %s1705_s20  ;;  %s1733_s20 = smov 45  }
 0x39a   :  { %905 = vrot.lane.b32.xlu1 %v2079_v29, %s1707_s21 }
 0x39c   :  { %893 = vrot.lane.b32.xlu0 %v2083_v1, %s1706_s0  ;;  %s1734_s0 = smov 44  }
 0x39e   :  { %919 = vrot.lane.b32.xlu1 %v2079_v29, %s1708_s22 }
 0x3a0   :  { %907 = vrot.lane.b32.xlu0 %v2083_v1, %s1707_s21  ;;  %s1735_s21 = smov 43  }
 0x3a2   :  { %933 = vrot.lane.b32.xlu1 %v2079_v29, %s1709_s23 }
 0x3a4   :  { %921 = vrot.lane.b32.xlu0 %v2083_v1, %s1708_s22  ;;  %s1736_s22 = smov 42  }
 0x3a6   :  { %947 = vrot.lane.b32.xlu1 %v2079_v29, %s1710_s24 }
 0x3a8   :  { %935 = vrot.lane.b32.xlu0 %v2083_v1, %s1709_s23  ;;  %s1737_s23 = smov 32  }
 0x3aa   :  { %961 = vrot.lane.b32.xlu1 %v2079_v29, %s1711_s25 }
 0x3ac   :  { %949 = vrot.lane.b32.xlu0 %v2083_v1, %s1710_s24  ;;  %s1738_s24 = smov 31  }
 0x3ae   :  { %975 = vrot.lane.b32.xlu1 %v2079_v29, %s1712_s26 }
 0x3b0   :  { %963 = vrot.lane.b32.xlu0 %v2083_v1, %s1711_s25  ;;  %s1739_s25 = smov 30  }
 0x3b2   :  { %989 = vrot.lane.b32.xlu1 %v2079_v29, %s1713_s27 }
 0x3b4   :  { %977 = vrot.lane.b32.xlu0 %v2083_v1, %s1712_s26  ;;  %s1740_s26 = smov 29  }
 0x3b6   :  { %1003 = vrot.lane.b32.xlu1 %v2079_v29, %s1714_s28 }
 0x3b8   :  { %991 = vrot.lane.b32.xlu0 %v2083_v1, %s1713_s27  ;;  %s1741_s27 = smov 28  }
 0x3ba   :  { %1017 = vrot.lane.b32.xlu1 %v2079_v29, %s1715_s4 }
 0x3bc   :  { %1005 = vrot.lane.b32.xlu0 %v2083_v1, %s1714_s28  ;;  %s1742_s28 = smov 27  }
 0x3be   :  { %1031 = vrot.lane.b32.xlu1 %v2079_v29, %s1716_s5 }
 0x3c0   :  { %1019 = vrot.lane.b32.xlu0 %v2083_v1, %s1715_s4  ;;  %s1743_s4 = smov 26  }
 0x3c2   :  { %1045 = vrot.lane.b32.xlu1 %v2079_v29, %s1717_s1 }
 0x3c4   :  { %1033 = vrot.lane.b32.xlu0 %v2083_v1, %s1716_s5  ;;  %s1531_s5 = sld [smem:[#allocation9 + $0x2]] }
 0x3c6   :  { %1059 = vrot.lane.b32.xlu1 %v2079_v29, %s1718_s29 }
 0x3c8   :  { %1047 = vrot.lane.b32.xlu0 %v2083_v1, %s1717_s1  ;;  %s1745_s1 = smov [#allocation10]  }
 0x3ca   :  { %1073 = vrot.lane.b32.xlu1 %v2079_v29, %s1719_s30 }
 0x3cc   :  { %1061 = vrot.lane.b32.xlu0 %v2083_v1, %s1718_s29  ;;  %s1515_s29 = sshll.u32 %s1745_s1, 4  ;;  %s1516_s29 = int_to_ptr.vmem [resolvable:$true] %s1515_s29 }
 0x3cd   :  { %p1662_p8 = scmp.lt.s32.totalorder %s1516_s29, %s1516_s29 }
 0x3ce   :  { %1087 = vrot.lane.b32.xlu1 %v2079_v29, %s1720_s9 }
 0x3d0   :  { %1075 = vrot.lane.b32.xlu0 %v2083_v1, %s1719_s30  ;;  %s1657_s30 = scalar_lea.vmem %s1516_s29, 2048 }
 0x3d1   :  { %p1658_p7 = scmp.ne.s32.totalorder %s1516_s29, %s1657_s30  ;;  %p1663_p9 = scmp.lt.s32.totalorder %s1657_s30, %s1657_s30 }
 0x3d2   :  { %1101 = vrot.lane.b32.xlu1 %v2079_v29, %s1721_s10 }
 0x3d3   :  { %p1664_p10 = por %p1663_p9, %p1662_p8 }
 0x3d4   :  { %1089 = vrot.lane.b32.xlu0 %v2083_v1, %s1720_s9 }
 0x3d5   :  { %p1665_p11 = pnand %p1664_p10, %p1658_p7 }
 0x3d6   :  { %1115 = vrot.lane.b32.xlu1 %v2079_v29, %s1722_s11 }
 0x3d8   :  { %1103 = vrot.lane.b32.xlu0 %v2083_v1, %s1721_s10 }
 0x3da   :  { %1129 = vrot.lane.b32.xlu1 %v2079_v29, %s1723_s2 }
 0x3dc   :  { %1117 = vrot.lane.b32.xlu0 %v2083_v1, %s1722_s11 }
 0x3de   :  { %1143 = vrot.lane.b32.xlu1 %v2079_v29, %s1724_s3 }
 0x3e0   :  { %1131 = vrot.lane.b32.xlu0 %v2083_v1, %s1723_s2  ;;  %v751_v5 = vpop.permute.xlu1 %750 }
 0x3e1   :  { %v754_v35 = vrot.slane %v751_v5, 4 }
 0x3e2   :  { %1157 = vrot.lane.b32.xlu1 %v2079_v29, %s1725_s12 }
 0x3e4   :  { %1145 = vrot.lane.b32.xlu0 %v2083_v1, %s1724_s3  ;;  %v766_v6 = vpop.permute.xlu1 %765 }
 0x3e5   :  { %v769_v43 = vrot.slane %v766_v6, 4 }
 0x3e6   :  { %v753_v2 = vpop.permute.xlu0 %752  ;;  %1171 = vrot.lane.b32.xlu1 %v2079_v29, %s1726_s13 }
 0x3e7   :  { %v755_v13 = vrot.slane %v753_v2, 4 }
 0x3e8   :  { %1159 = vrot.lane.b32.xlu0 %v2083_v1, %s1725_s12  ;;  %v780_v38 = vpop.permute.xlu1 %779 }
 0x3e9   :  { %v757_v39 = vsel %vm756_vm9, %v754_v35, %v755_v13  ;;  %v783_v61 = vrot.slane %v780_v38, 4 }
 0x3ea   :  { %v759_v49 = vsel %vm758_vm10, %v751_v5, %v757_v39  ;;  %v768_v50 = vpop.permute.xlu0 %767  ;;  %1185 = vrot.lane.b32.xlu1 %v2079_v29, %s1727_s14  ;;  %vm968_vm10 = vcmask 769024  }
 0x3eb   :  { %v761_v51 = vmul.f32 %v759_v49, %v747_v36  ;;  %v770_v52 = vrot.slane %v768_v50, 4 }
 0x3ec   :  { %1173 = vrot.lane.b32.xlu0 %v2083_v1, %s1726_s13  ;;  %v794_v44 = vpop.permute.xlu1 %793 }
 0x3ed   :  { %v771_v45 = vsel %vm756_vm9, %v769_v43, %v770_v52  ;;  %v762_v46 = vadd.f32 %v761_v51, %v743_v14  ;;  %v797_v59 = vrot.slane %v794_v44, 4 }
 0x3ee   :  { %v773_v15 = vsel %vm772_vm11, %v766_v6, %v771_v45  ;;  %v782_v57 = vpop.permute.xlu0 %781  ;;  %1199 = vrot.lane.b32.xlu1 %v2079_v29, %s1728_s15  ;;  %v834_v45 = vld [vmem:[#allocation7 + $0x38] sm:$0xff]  ;;  %vm982_vm11 = vcmask 760832  }
 0x3ef   :  { %v775_v47 = vmul.f32 %v773_v15, %v764_v53  ;;  %v784_v60 = vrot.slane %v782_v57, 4 }
 0x3f0   :  { %1187 = vrot.lane.b32.xlu0 %v2083_v1, %s1727_s14  ;;  %v808_v7 = vpop.permute.xlu1 %807 }
 0x3f1   :  { %v776_v41 = vadd.f32 %v775_v47, %v762_v46  ;;  %v785_v10 = vsel %vm756_vm9, %v783_v61, %v784_v60  ;;  %v811_v54 = vrot.slane %v808_v7, 4 }
 0x3f2   :  { %v787_v58 = vsel %vm786_vm12, %v780_v38, %v785_v10  ;;  %v796_v22 = vpop.permute.xlu0 %795  ;;  %1213 = vrot.lane.b32.xlu1 %v2079_v29, %s1729_s16  ;;  %vm996_vm12 = vcmask 752640  }
 0x3f3   :  { %v789_v23 = vmul.f32 %v787_v58, %v778_v62  ;;  %v798_v42 = vrot.slane %v796_v22, 4 }
 0x3f4   :  { %1201 = vrot.lane.b32.xlu0 %v2083_v1, %s1728_s15  ;;  %v822_v16 = vpop.permute.xlu1 %821 }
 0x3f5   :  { %v790_v40 = vadd.f32 %v789_v23, %v776_v41  ;;  %v799_v20 = vsel %vm756_vm9, %v797_v59, %v798_v42  ;;  %v825_v39 = vrot.slane %v822_v16, 4  ;;  %v848_v41 = vld [vmem:[#allocation7 + $0x40] sm:$0xff] }
 0x3f6   :  { %v801_v17 = vsel %vm800_vm13, %v794_v44, %v799_v20  ;;  %v810_v55 = vpop.permute.xlu0 %809  ;;  %1227 = vrot.lane.b32.xlu1 %v2079_v29, %s1730_s17  ;;  %vm1010_vm13 = vcmask 744448  }
 0x3f7   :  { %v803_v21 = vmul.f32 %v801_v17, %v792_v11  ;;  %v812_v24 = vrot.slane %v810_v55, 4 }
 0x3f8   :  { %1215 = vrot.lane.b32.xlu0 %v2083_v1, %s1729_s16  ;;  %v836_v5 = vpop.permute.xlu1 %835 }
 0x3f9   :  { %v804_v6 = vadd.f32 %v803_v21, %v790_v40  ;;  %v813_v2 = vsel %vm756_vm9, %v811_v54, %v812_v24  ;;  %v839_v14 = vrot.slane %v836_v5, 4  ;;  %v862_v40 = vld [vmem:[#allocation7 + $0x48] sm:$0xff] }
 0x3fa   :  { %v815_v13 = vsel %vm814_vm14, %v808_v7, %v813_v2  ;;  %v824_v35 = vpop.permute.xlu0 %823  ;;  %1241 = vrot.lane.b32.xlu1 %v2079_v29, %s1731_s18  ;;  %vm1024_vm14 = vcmask 736256  }
 0x3fb   :  { %v817_v36 = vmul.f32 %v815_v13, %v806_v25  ;;  %v826_v38 = vrot.slane %v824_v35, 4 }
 0x3fc   :  { %1229 = vrot.lane.b32.xlu0 %v2083_v1, %s1730_s17  ;;  %v850_v49 = vpop.permute.xlu1 %849 }
 0x3fd   :  { %v818_v50 = vadd.f32 %v817_v36, %v804_v6  ;;  %v827_v51 = vsel %vm756_vm9, %v825_v39, %v826_v38  ;;  %v853_v7 = vrot.slane %v850_v49, 4  ;;  %v876_v6 = vld [vmem:[#allocation7 + $0x50] sm:$0xff] }
 0x3fe   :  { %v829_v52 = vsel %vm828_vm15, %v822_v16, %v827_v51  ;;  %v838_v43 = vpop.permute.xlu0 %837  ;;  %1255 = vrot.lane.b32.xlu1 %v2079_v29, %s1732_s19  ;;  %vm1038_vm15 = vcmask 654336  }
 0x3ff   :  { %v831_v53 = vmul.f32 %v829_v52, %v820_v48  ;;  %v840_v44 = vrot.slane %v838_v43, 4 }
 0x400   :  { %1243 = vrot.lane.b32.xlu0 %v2083_v1, %s1731_s18  ;;  %v864_v15 = vpop.permute.xlu1 %863 }
 0x401   :  { %v832_v57 = vadd.f32 %v831_v53, %v818_v50  ;;  %v841_v46 = vsel %vm756_vm9, %v839_v14, %v840_v44  ;;  %v867_v16 = vrot.slane %v864_v15, 4  ;;  %v890_v50 = vld [vmem:[#allocation7 + $0x58] sm:$0xff] }
 0x402   :  { %v843_v47 = vsel %vm842_vm0, %v836_v5, %v841_v46  ;;  %v852_v60 = vpop.permute.xlu0 %851  ;;  %1269 = vrot.lane.b32.xlu1 %v2079_v29, %s1733_s20  ;;  %vm1052_vm0 = vcmask 646144  }
 0x403   :  { %v845_v61 = vmul.f32 %v843_v47, %v834_v45  ;;  %v854_v62 = vrot.slane %v852_v60, 4 }
 0x404   :  { %1257 = vrot.lane.b32.xlu0 %v2083_v1, %s1732_s19  ;;  %v878_v10 = vpop.permute.xlu1 %877 }
 0x405   :  { %v846_v58 = vadd.f32 %v845_v61, %v832_v57  ;;  %v855_v22 = vsel %vm756_vm9, %v853_v7, %v854_v62  ;;  %v881_v5 = vrot.slane %v878_v10, 4  ;;  %v904_v57 = vld [vmem:[#allocation7 + $0x60] sm:$0xff] }
 0x406   :  { %v857_v23 = vsel %vm856_vm1, %v850_v49, %v855_v22  ;;  %v866_v42 = vpop.permute.xlu0 %865  ;;  %1283 = vrot.lane.b32.xlu1 %v2079_v29, %s1734_s0  ;;  %vm1066_vm1 = vcmask 637952  }
 0x407   :  { %v859_v59 = vmul.f32 %v857_v23, %v848_v41  ;;  %v868_v11 = vrot.slane %v866_v42, 4 }
 0x408   :  { %1271 = vrot.lane.b32.xlu0 %v2083_v1, %s1733_s20  ;;  %v892_v20 = vpop.permute.xlu1 %891 }
 0x409   :  { %v860_v17 = vadd.f32 %v859_v59, %v846_v58  ;;  %v869_v55 = vsel %vm756_vm9, %v867_v16, %v868_v11  ;;  %v895_v49 = vrot.slane %v892_v20, 4  ;;  %v918_v58 = vld [vmem:[#allocation7 + $0x68] sm:$0xff] }
 0x40a   :  { %v871_v21 = vsel %vm870_vm2, %v864_v15, %v869_v55  ;;  %v880_v24 = vpop.permute.xlu0 %879  ;;  %1297 = vrot.lane.b32.xlu1 %v2079_v29, %s1735_s21  ;;  %vm1080_vm2 = vcmask 629760  }
 0x40b   :  { %v873_v54 = vmul.f32 %v871_v21, %v862_v40  ;;  %v882_v25 = vrot.slane %v880_v24, 4 }
 0x40c   :  { %1285 = vrot.lane.b32.xlu0 %v2083_v1, %s1734_s0  ;;  %v906_v2 = vpop.permute.xlu1 %905 }
 0x40d   :  { %v874_v13 = vadd.f32 %v873_v54, %v860_v17  ;;  %v883_v35 = vsel %vm756_vm9, %v881_v5, %v882_v25  ;;  %v909_v15 = vrot.slane %v906_v2, 4  ;;  %v932_v17 = vld [vmem:[#allocation7 + $0x70] sm:$0xff] }
 0x40e   :  { %v885_v36 = vsel %vm884_vm3, %v878_v10, %v883_v35  ;;  %v894_v38 = vpop.permute.xlu0 %893  ;;  %1311 = vrot.lane.b32.xlu1 %v2079_v29, %s1736_s22  ;;  %vm1094_vm3 = vcmask 621568  }
 0x40f   :  { %v887_v39 = vmul.f32 %v885_v36, %v876_v6  ;;  %v896_v48 = vrot.slane %v894_v38, 4 }
 0x410   :  { %1299 = vrot.lane.b32.xlu0 %v2083_v1, %s1735_s21  ;;  %v920_v51 = vpop.permute.xlu1 %919 }
 0x411   :  { %v888_v52 = vadd.f32 %v887_v39, %v874_v13  ;;  %v897_v43 = vsel %vm756_vm9, %v895_v49, %v896_v48  ;;  %v923_v10 = vrot.slane %v920_v51, 4  ;;  %v946_v13 = vld [vmem:[#allocation7 + $0x78] sm:$0xff] }
 0x412   :  { %v899_v53 = vsel %vm898_vm4, %v892_v20, %v897_v43  ;;  %v908_v44 = vpop.permute.xlu0 %907  ;;  %1325 = vrot.lane.b32.xlu1 %v2079_v29, %s1737_s23  ;;  %vm1108_vm4 = vcmask 613376  }
 0x413   :  { %v901_v14 = vmul.f32 %v899_v53, %v890_v50  ;;  %v910_v45 = vrot.slane %v908_v44, 4 }
 0x414   :  { %1313 = vrot.lane.b32.xlu0 %v2083_v1, %s1736_s22  ;;  %v934_v46 = vpop.permute.xlu1 %933 }
 0x415   :  { %v902_v47 = vadd.f32 %v901_v14, %v888_v52  ;;  %v911_v60 = vsel %vm756_vm9, %v909_v15, %v910_v45  ;;  %v937_v20 = vrot.slane %v934_v46, 4  ;;  %v960_v52 = vld [vmem:[#allocation7 + $0x80] sm:$0xff] }
 0x416   :  { %v913_v61 = vsel %vm912_vm5, %v906_v2, %v911_v60  ;;  %v922_v62 = vpop.permute.xlu0 %921  ;;  %1339 = vrot.lane.b32.xlu1 %v2079_v29, %s1738_s24  ;;  %vm1122_vm5 = vcmask 605184  }
 0x417   :  { %v915_v7 = vmul.f32 %v913_v61, %v904_v57  ;;  %v924_v41 = vrot.slane %v922_v62, 4 }
 0x418   :  { %1327 = vrot.lane.b32.xlu0 %v2083_v1, %s1737_s23  ;;  %v948_v22 = vpop.permute.xlu1 %947 }
 0x419   :  { %v916_v23 = vadd.f32 %v915_v7, %v902_v47  ;;  %v925_v42 = vsel %vm756_vm9, %v923_v10, %v924_v41  ;;  %v951_v2 = vrot.slane %v948_v22, 4  ;;  %v974_v47 = vld [vmem:[#allocation7 + $0x88] sm:$0xff] }
 0x41a   :  { %v927_v59 = vsel %vm926_vm6, %v920_v51, %v925_v42  ;;  %v936_v11 = vpop.permute.xlu0 %935  ;;  %1353 = vrot.lane.b32.xlu1 %v2079_v29, %s1739_s25  ;;  %vm1136_vm6 = vcmask 523264  }
 0x41b   :  { %v929_v16 = vmul.f32 %v927_v59, %v918_v58  ;;  %v938_v40 = vrot.slane %v936_v11, 4 }
 0x41c   :  { %1341 = vrot.lane.b32.xlu0 %v2083_v1, %s1738_s24  ;;  %v962_v55 = vpop.permute.xlu1 %961 }
 0x41d   :  { %v930_v21 = vadd.f32 %v929_v16, %v916_v23  ;;  %v939_v24 = vsel %vm756_vm9, %v937_v20, %v938_v40  ;;  %v965_v51 = vrot.slane %v962_v55, 4 }
 0x41e   :  { %v941_v54 = vsel %vm940_vm7, %v934_v46, %v939_v24  ;;  %v950_v25 = vpop.permute.xlu0 %949  ;;  %1367 = vrot.lane.b32.xlu1 %v2079_v29, %s1740_s26  ;;  %vm1150_vm7 = vcmask 515072  }
 0x41f   :  { %v943_v5 = vmul.f32 %v941_v54, %v932_v17  ;;  %v952_v6 = vrot.slane %v950_v25, 4 }
 0x420   :  { %1355 = vrot.lane.b32.xlu0 %v2083_v1, %s1739_s25  ;;  %v976_v35 = vpop.permute.xlu1 %975 }
 0x421   :  { %v944_v36 = vadd.f32 %v943_v5, %v930_v21  ;;  %v953_v38 = vsel %vm756_vm9, %v951_v2, %v952_v6  ;;  %v979_v46 = vrot.slane %v976_v35, 4 }
 0x422   :  { %v955_v39 = vsel %vm954_vm8, %v948_v22, %v953_v38  ;;  %v964_v48 = vpop.permute.xlu0 %963  ;;  %1381 = vrot.lane.b32.xlu1 %v2079_v29, %s1741_s27  ;;  %vm1164_vm8 = vcmask 506880  }
 0x423   :  { %v957_v49 = vmul.f32 %v955_v39, %v946_v13  ;;  %v966_v50 = vrot.slane %v964_v48, 4 }
 0x424   :  { %1369 = vrot.lane.b32.xlu0 %v2083_v1, %s1740_s26  ;;  %v990_v43 = vpop.permute.xlu1 %989 }
 0x425   :  { %v958_v53 = vadd.f32 %v957_v49, %v944_v36  ;;  %v967_v44 = vsel %vm756_vm9, %v965_v51, %v966_v50  ;;  %v993_v50 = vrot.slane %v990_v43, 4 }
 0x426   :  { %v969_v14 = vsel %vm968_vm10, %v962_v55, %v967_v44  ;;  %v978_v45 = vpop.permute.xlu0 %977  ;;  %1395 = vrot.lane.b32.xlu1 %v2079_v29, %s1742_s28  ;;  %vm1178_vm10 = vcmask 498688  }
 0x427   :  { %v971_v15 = vmul.f32 %v969_v14, %v960_v52  ;;  %v980_v57 = vrot.slane %v978_v45, 4 }
 0x428   :  { %1383 = vrot.lane.b32.xlu0 %v2083_v1, %s1741_s27  ;;  %v1004_v60 = vpop.permute.xlu1 %1003 }
 0x429   :  { %v972_v61 = vadd.f32 %v971_v15, %v958_v53  ;;  %v981_v62 = vsel %vm756_vm9, %v979_v46, %v980_v57  ;;  %v1007_v44 = vrot.slane %v1004_v60, 4  ;;  %v988_v15 = vld [vmem:[#allocation7 + $0x90] sm:$0xff] }
 0x42a   :  { %v983_v7 = vsel %vm982_vm11, %v976_v35, %v981_v62  ;;  %v992_v41 = vpop.permute.xlu0 %991  ;;  %1409 = vrot.lane.b32.xlu1 %v2079_v29, %s1743_s4  ;;  %vm1192_vm11 = vcmask 490496  }
 0x42b   :  { %v985_v10 = vmul.f32 %v983_v7, %v974_v47  ;;  %v994_v48 = vrot.slane %v992_v41, 4 }
 0x42c   :  { %1397 = vrot.lane.b32.xlu0 %v2083_v1, %s1742_s28  ;;  %v1018_v58 = vpop.permute.xlu1 %1017 }
 0x42d   :  { %v2196_v22 = vadd.f32 %v985_v10, %v972_v61  ;;  %v995_v53 = vsel %vm756_vm9, %v993_v50, %v994_v48  ;;  %v1021_v47 = vrot.slane %v1018_v58, 4  ;;  %v1002_v48 = vld [vmem:[#allocation7 + $0x98] sm:$0xff] }
 0x42e   :  { %v1006_v23 = vpop.permute.xlu0 %1005  ;;  %v997_v57 = vsel %vm996_vm12, %v990_v43, %v995_v53  ;;  %vm1206_vm12 = vcmask 482304  }
 0x42f   :  { %v1008_v51 = vrot.slane %v1006_v23, 4 }
 0x430   :  { %1411 = vrot.lane.b32.xlu0 %v2083_v1, %s1743_s4  ;;  %v2199_v42 = vpop.permute.xlu1 %1031 }
 0x431   :  { %v1009_v46 = vsel %vm756_vm9, %v1007_v44, %v1008_v51  ;;  %v1035_v41 = vrot.slane %v2199_v42, 4  ;;  %v1016_v44 = vld [vmem:[#allocation7 + $0xa0] sm:$0xff] }
 0x432   :  { %v1020_v59 = vpop.permute.xlu0 %1019  ;;  %v1011_v50 = vsel %vm1010_vm13, %v1004_v60, %v1009_v46  ;;  %v1030_v46 = vld [vmem:[#allocation7 + $0xa8] sm:$0xff]  ;;  %vm1220_vm13 = vcmask 474112  }
 0x433   :  { %v1022_v14 = vrot.slane %v1020_v59, 4  ;;  %v999_v59 = vmul.f32 %v997_v57, %v988_v15 }
 0x434   :  { %v2201_v11 = vpop.permute.xlu1 %1045 }
 0x435   :  { %v1023_v7 = vsel %vm756_vm9, %v1021_v47, %v1022_v14  ;;  %v1049_v51 = vrot.slane %v2201_v11, 4  ;;  %v1013_v14 = vmul.f32 %v1011_v50, %v1002_v48  ;;  %v1000_v60 = vadd.f32 %v999_v59, %v2196_v22  ;;  %v1044_v48 = vld [vmem:[#allocation7 + $0xb0] sm:$0xff] }
 0x436   :  { %v1034_v16 = vpop.permute.xlu0 %1033  ;;  %v1025_v12 = vsel %vm1024_vm14, %v1018_v58, %v1023_v7  ;;  %vm1234_vm14 = vcmask 392192  }
 0x437   :  { %v1036_v61 = vrot.slane %v1034_v16, 4  ;;  %v1014_v50 = vadd.f32 %v1013_v14, %v1000_v60  ;;  %v1072_v14 = vld [vmem:[#allocation7 + $0xc0] sm:$0xff] }
 0x438   :  { %v2203_v40 = vpop.permute.xlu1 %1059 }
 0x439   :  { %v1037_v43 = vsel %vm756_vm9, %v1035_v41, %v1036_v61 }
 0x43a   :  { %v1048_v20 = vpop.permute.xlu0 %1047  ;;  %v1039_v61 = vsel %vm1038_vm15, %v2199_v42, %v1037_v43  ;;  %v1058_v43 = vld [vmem:[#allocation7 + $0xb8] sm:$0xff]  ;;  %vm1248_vm15 = vcmask 384000  }
 0x43b   :  { %v1050_v10 = vrot.slane %v1048_v20, 4  ;;  %v1063_v20 = vrot.slane %v2203_v40, 4  ;;  %v1041_v22 = vmul.f32 %v1039_v61, %v1030_v46 }
 0x43c   :  { %v2205_v17 = vpop.permute.xlu1 %1073 }
 0x43d   :  { %v1051_v47 = vsel %vm756_vm9, %v1049_v51, %v1050_v10  ;;  %v1077_v58 = vrot.slane %v2205_v17, 4 }
 0x43e   :  { %v1062_v29 = vpop.permute.xlu0 %1061 }
 0x43f   :  { %v1064_v53 = vrot.slane %v1062_v29, 4  ;;  %v1027_v29 = vmul.f32 %v1025_v12, %v1016_v44 }
 0x440   :  { %v2207_v55 = vpop.permute.xlu1 %1087 }
 0x441   :  { %v1065_v41 = vsel %vm756_vm9, %v1063_v20, %v1064_v53  ;;  %v1091_v42 = vrot.slane %v2207_v55, 4  ;;  %v1028_v53 = vadd.f32 %v1027_v29, %v1014_v50 }
 0x442   :  { %v2209_v21 = vpop.permute.xlu0 %1075  ;;  %v1067_v51 = vsel %vm1066_vm1, %v2203_v40, %v1065_v41  ;;  %vm1276_vm1 = vcmask 367616  }
 0x443   :  { %v1078_v15 = vrot.slane %v2209_v21, 4  ;;  %v1053_v21 = vsel %vm1052_vm0, %v2201_v11, %v1051_v47  ;;  %v1042_v46 = vadd.f32 %v1041_v22, %v1028_v53  ;;  %v1069_v61 = vmul.f32 %v1067_v51, %v1058_v43 }
 0x444   :  { %v2211_v24 = vpop.permute.xlu1 %1101  ;;  %v1055_v44 = vmul.f32 %v1053_v21, %v1044_v48  ;;  %vm1262_vm0 = vcmask 375808  }
 0x445   :  { %v1079_v59 = vsel %vm756_vm9, %v1077_v58, %v1078_v15  ;;  %v1105_v15 = vrot.slane %v2211_v24, 4 }
 0x446   :  { %v2213_v54 = vpop.permute.xlu0 %1089  ;;  %v1081_v47 = vsel %vm1080_vm2, %v2205_v17, %v1079_v59  ;;  %v1056_v48 = vadd.f32 %v1055_v44, %v1042_v46  ;;  %vm1290_vm2 = vcmask 359424  }
 0x447   :  { %v1092_v7 = vrot.slane %v2213_v54, 4  ;;  %v1083_v17 = vmul.f32 %v1081_v47, %v1072_v14 }
 0x448   :  { %v2215_v1 = vpop.permute.xlu1 %1115  ;;  %v1070_v59 = vadd.f32 %v1069_v61, %v1056_v48  ;;  %v1128_v61 = vld [vmem:[#allocation7 + $0xe0] sm:$0xff] }
 0x449   :  { %v1093_v20 = vsel %vm756_vm9, %v1091_v42, %v1092_v7  ;;  %v1119_v58 = vrot.slane %v2215_v1, 4 }
 0x44a   :  { %v2217_v25 = vpop.permute.xlu0 %1103  ;;  %v1095_v29 = vsel %vm1094_vm3, %v2207_v55, %v1093_v20  ;;  %v1100_v55 = vld [vmem:[#allocation7 + $0xd0] sm:$0xff]  ;;  %v1084_v44 = vadd.f32 %v1083_v17, %v1070_v59  ;;  %v1114_v20 = vld [vmem:[#allocation7 + $0xd8] sm:$0xff]  ;;  %vm1304_vm3 = vcmask 351232  }
 0x44b   :  { %v1106_v54 = vrot.slane %v2217_v25, 4  ;;  %v1086_v25 = vld [vmem:[#allocation7 + $0xc8] sm:$0xff] }
 0x44c   :  { %v2219_v5 = vpop.permute.xlu1 %1129  ;;  %v1097_v42 = vmul.f32 %v1095_v29, %v1086_v25 }
 0x44d   :  { %v1107_v41 = vsel %vm756_vm9, %v1105_v15, %v1106_v54  ;;  %v1133_v50 = vrot.slane %v2219_v5, 4 }
 0x44e   :  { %v2221_v6 = vpop.permute.xlu0 %1117  ;;  %v1109_v43 = vsel %vm1108_vm4, %v2211_v24, %v1107_v41  ;;  %v1098_v46 = vadd.f32 %v1097_v42, %v1084_v44  ;;  %vm1318_vm4 = vcmask 343040  }
 0x44f   :  { %v1120_v60 = vrot.slane %v2221_v6, 4  ;;  %v1111_v47 = vmul.f32 %v1109_v43, %v1100_v55 }
 0x450   :  { %v2223_v2 = vpop.permute.xlu1 %1143 }
 0x451   :  { %v1121_v6 = vsel %vm756_vm9, %v1119_v58, %v1120_v60  ;;  %v1147_v54 = vrot.slane %v2223_v2, 4  ;;  %v1112_v17 = vadd.f32 %v1111_v47, %v1098_v46 }
 0x452   :  { %v2225_v13 = vpop.permute.xlu0 %1131  ;;  %v1123_v14 = vsel %vm1122_vm5, %v2215_v1, %v1121_v6  ;;  %vm1332_vm5 = vcmask 261120  }
 0x453   :  { %v1134_v7 = vrot.slane %v2225_v13, 4  ;;  %v1125_v29 = vmul.f32 %v1123_v14, %v1114_v20 }
 0x454   :  { %v2227_v35 = vpop.permute.xlu1 %1157 }
 0x455   :  { %v1135_v13 = vsel %vm756_vm9, %v1133_v50, %v1134_v7  ;;  %v1161_v24 = vrot.slane %v2227_v35, 4  ;;  %v1142_v7 = vld [vmem:[#allocation7 + $0xe8] sm:$0xff] }
 0x456   :  { %v2229_v36 = vpop.permute.xlu0 %1145  ;;  %v1137_v25 = vsel %vm1136_vm6, %v2219_v5, %v1135_v13  ;;  %v1170_v13 = vld [vmem:[#allocation7 + $0xf8] sm:$0xff]  ;;  %vm1346_vm6 = vcmask 252928  }
 0x457   :  { %v1148_v22 = vrot.slane %v2229_v36, 4  ;;  %v1139_v6 = vmul.f32 %v1137_v25, %v1128_v61 }
 0x458   :  { %v2231_v38 = vpop.permute.xlu1 %1171 }
 0x459   :  { %v1149_v15 = vsel %vm756_vm9, %v1147_v54, %v1148_v22  ;;  %v1175_v41 = vrot.slane %v2231_v38, 4  ;;  %v1156_v22 = vld [vmem:[#allocation7 + $0xf0] sm:$0xff] }
 0x45a   :  { %v2233_v39 = vpop.permute.xlu0 %1159  ;;  %v1151_v48 = vsel %vm1150_vm7, %v2223_v2, %v1149_v15  ;;  %vm1360_vm7 = vcmask 244736  }
 0x45b   :  { %v1162_v53 = vrot.slane %v2233_v39, 4  ;;  %v1153_v43 = vmul.f32 %v1151_v48, %v1142_v7 }
 0x45c   :  { %v2235_v49 = vpop.permute.xlu1 %1185 }
 0x45d   :  { %v1163_v1 = vsel %vm756_vm9, %v1161_v24, %v1162_v53  ;;  %v1189_v50 = vrot.slane %v2235_v49, 4 }
 0x45e   :  { %v2237_v52 = vpop.permute.xlu0 %1173  ;;  %v1165_v59 = vsel %vm1164_vm8, %v2227_v35, %v1163_v1  ;;  %v1184_v35 = vld [vmem:[#allocation7 + $0x100] sm:$0xff]  ;;  %vm1374_vm8 = vcmask 236544  }
 0x45f   :  { %v1176_v60 = vrot.slane %v2237_v52, 4  ;;  %v1167_v47 = vmul.f32 %v1165_v59, %v1156_v22 }
 0x460   :  { %v2240_v45 = vpop.permute.xlu1 %1199 }
 0x461   :  { %v1177_v5 = vsel %vm756_vm9, %v1175_v41, %v1176_v60  ;;  %v1203_v53 = vrot.slane %v2240_v45, 4 }
 0x462   :  { %v2243_v62 = vpop.permute.xlu0 %1187  ;;  %v1179_v54 = vsel %vm1178_vm10, %v2231_v38, %v1177_v5  ;;  %vm1388_vm10 = vcmask 228352  }
 0x463   :  { %v1190_v58 = vrot.slane %v2243_v62, 4  ;;  %v1126_v62 = vadd.f32 %v1125_v29, %v1112_v17  ;;  %v1181_v61 = vmul.f32 %v1179_v54, %v1170_v13 }
 0x464   :  { %v2247_v23 = vpop.permute.xlu1 %1213 }
 0x465   :  { %v1191_v2 = vsel %vm756_vm9, %v1189_v50, %v1190_v58  ;;  %v1140_v14 = vadd.f32 %v1139_v6, %v1126_v62  ;;  %v1217_v24 = vrot.slane %v2247_v23, 4  ;;  %v1198_v58 = vld [vmem:[#allocation7 + $0x108] sm:$0xff]  ;;  %v1212_v50 = vld [vmem:[#allocation7 + $0x110] sm:$0xff] }
 0x466   :  { %v2251_v16 = vpop.permute.xlu0 %1201 }
 0x467   :  { %v1204_v42 = vrot.slane %v2251_v16, 4  ;;  %v1193_v16 = vsel %vm1192_vm11, %v2235_v49, %v1191_v2  ;;  %v1154_v38 = vadd.f32 %v1153_v43, %v1140_v14  ;;  %v1226_v2 = vld [vmem:[#allocation7 + $0x118] sm:$0xff]  ;;  %v1240_v14 = vld [vmem:[#allocation7 + $0x120] sm:$0xff]  ;;  %vm1402_vm11 = vcmask 220160  }
 0x468   :  { %v2256_v57 = vpop.permute.xlu1 %1227  ;;  %v1195_v49 = vmul.f32 %v1193_v16, %v1184_v35 }
 0x469   :  { %v1205_v15 = vsel %vm756_vm9, %v1203_v53, %v1204_v42  ;;  %v1231_v25 = vrot.slane %v2256_v57, 4  ;;  %v1168_v41 = vadd.f32 %v1167_v47, %v1154_v38 }
 0x46a   :  { %v2263_v10 = vpop.permute.xlu0 %1215  ;;  %v1207_v7 = vsel %vm1206_vm12, %v2240_v45, %v1205_v15  ;;  %vm1416_vm12 = vcmask 211968  }
 0x46b   :  { %v1218_v44 = vrot.slane %v2263_v10, 4  ;;  %v1182_v5 = vadd.f32 %v1181_v61, %v1168_v41  ;;  %v1209_v22 = vmul.f32 %v1207_v7, %v1198_v58 }
 0x46c   :  { %v2269_v12 = vpop.permute.xlu1 %1241 }
 0x46d   :  { %v1219_v10 = vsel %vm756_vm9, %v1217_v24, %v1218_v44  ;;  %v1245_v48 = vrot.slane %v2269_v12, 4  ;;  %v1196_v43 = vadd.f32 %v1195_v49, %v1182_v5  ;;  %v1254_v24 = vld [vmem:[#allocation7 + $0x128] sm:$0xff] }
 0x46e   :  { %v2274_v11 = vpop.permute.xlu0 %1229 }
 0x46f   :  { %v1232_v60 = vrot.slane %v2274_v11, 4 }
 0x470   :  { %v2279_v40 = vpop.permute.xlu1 %1255 }
 0x471   :  { %v1233_v11 = vsel %vm756_vm9, %v1231_v25, %v1232_v60  ;;  %v1259_v45 = vrot.slane %v2279_v40, 4 }
 0x472   :  { %v2285_v21 = vpop.permute.xlu0 %1243 }
 0x473   :  { %v1246_v29 = vrot.slane %v2285_v21, 4  ;;  %v1221_v21 = vsel %vm1220_vm13, %v2247_v23, %v1219_v10 }
 0x474   :  { %v2292_v51 = vpop.permute.xlu1 %1269  ;;  %v1223_v13 = vmul.f32 %v1221_v21, %v1212_v50 }
 0x475   :  { %v1247_v59 = vsel %vm756_vm9, %v1245_v48, %v1246_v29  ;;  %v1273_v23 = vrot.slane %v2292_v51, 4  ;;  %v1268_v29 = vld [vmem:[#allocation7 + $0x130] sm:$0xff]  ;;  %v1282_v48 = vld [vmem:[#allocation7 + $0x138] sm:$0xff] }
 0x476   :  { %v2298_v36 = vpop.permute.xlu0 %1257  ;;  %v1249_v47 = vsel %vm1248_vm15, %v2269_v12, %v1247_v59 }
 0x477   :  { %v1260_v17 = vrot.slane %v2298_v36, 4  ;;  %v1235_v36 = vsel %vm1234_vm14, %v2256_v57, %v1233_v11 }
 0x478   :  { %v2304_v39 = vpop.permute.xlu1 %1283  ;;  %v1237_v35 = vmul.f32 %v1235_v36, %v1226_v2 }
 0x479   :  { %v1261_v54 = vsel %vm756_vm9, %v1259_v45, %v1260_v17  ;;  %v1287_v57 = vrot.slane %v2304_v39, 4 }
 0x47a   :  { %v2311_v52 = vpop.permute.xlu0 %1271  ;;  %v1263_v60 = vsel %vm1262_vm0, %v2279_v40, %v1261_v54 }
 0x47b   :  { %v1274_v42 = vrot.slane %v2311_v52, 4  ;;  %v1210_v52 = vadd.f32 %v1209_v22, %v1196_v43  ;;  %v1265_v7 = vmul.f32 %v1263_v60, %v1254_v24  ;;  %v1296_v43 = vld [vmem:[#allocation7 + $0x140] sm:$0xff] }
 0x47c   :  { %v2317_v55 = vpop.permute.xlu1 %1297 }
 0x47d   :  { %v1275_v16 = vsel %vm756_vm9, %v1273_v23, %v1274_v42  ;;  %v1224_v61 = vadd.f32 %v1223_v13, %v1210_v52  ;;  %v1301_v41 = vrot.slane %v2317_v55, 4 }
 0x47e   :  { %v1286_v20 = vpop.permute.xlu0 %1285  ;;  %v1277_v12 = vsel %vm1276_vm1, %v2292_v51, %v1275_v16 }
 0x47f   :  { %v1288_v53 = vrot.slane %v1286_v20, 4  ;;  %v1251_v20 = vmul.f32 %v1249_v47, %v1240_v14  ;;  %v1238_v58 = vadd.f32 %v1237_v35, %v1224_v61  ;;  %v1279_v21 = vmul.f32 %v1277_v12, %v1268_v29 }
 0x480   :  { %v2327_v46 = vpop.permute.xlu1 %1311 }
 0x481   :  { %v1289_v10 = vsel %vm756_vm9, %v1287_v57, %v1288_v53  ;;  %v1315_v17 = vrot.slane %v2327_v46, 4  ;;  %v1252_v50 = vadd.f32 %v1251_v20, %v1238_v58  ;;  %v1310_v53 = vld [vmem:[#allocation7 + $0x148] sm:$0xff] }
 0x482   :  { %v1300_v1 = vpop.permute.xlu0 %1299  ;;  %v1291_v40 = vsel %vm1290_vm2, %v2304_v39, %v1289_v10  ;;  %v1338_v10 = vld [vmem:[#allocation7 + $0x158] sm:$0xff] }
 0x483   :  { %v1302_v38 = vrot.slane %v1300_v1, 4  ;;  %v1266_v42 = vadd.f32 %v1265_v7, %v1252_v50 }
 0x484   :  { %v2337_v6 = vpop.permute.xlu1 %1325 }
 0x485   :  { %v1303_v1 = vsel %vm756_vm9, %v1301_v41, %v1302_v38  ;;  %v1329_v59 = vrot.slane %v2337_v6, 4  ;;  %v1280_v23 = vadd.f32 %v1279_v21, %v1266_v42 }
 0x486   :  { %v1314_v62 = vpop.permute.xlu0 %1313  ;;  %v1305_v39 = vsel %vm1304_vm3, %v2317_v55, %v1303_v1 }
 0x487   :  { %v1316_v49 = vrot.slane %v1314_v62, 4  ;;  %v1293_v62 = vmul.f32 %v1291_v40, %v1282_v48  ;;  %v1307_v52 = vmul.f32 %v1305_v39, %v1296_v43  ;;  %v1394_v39 = vld [vmem:[#allocation7 + $0x178] sm:$0xff] }
 0x488   :  { %v2348_v44 = vpop.permute.xlu1 %1339 }
 0x489   :  { %v1317_v51 = vsel %vm756_vm9, %v1315_v17, %v1316_v49  ;;  %v1343_v13 = vrot.slane %v2348_v44, 4  ;;  %v1294_v57 = vadd.f32 %v1293_v62, %v1280_v23  ;;  %v1352_v49 = vld [vmem:[#allocation7 + $0x160] sm:$0xff]  ;;  %v1366_v17 = vld [vmem:[#allocation7 + $0x168] sm:$0xff] }
 0x48a   :  { %v1328_v15 = vpop.permute.xlu0 %1327  ;;  %v1319_v14 = vsel %vm1318_vm4, %v2327_v46, %v1317_v51  ;;  %v1380_v51 = vld [vmem:[#allocation7 + $0x170] sm:$0xff] }
 0x48b   :  { %v1330_v5 = vrot.slane %v1328_v15, 4  ;;  %v1324_v15 = vld [vmem:[#allocation7 + $0x150] sm:$0xff]  ;;  %v1321_v60 = vmul.f32 %v1319_v14, %v1310_v53  ;;  %v1308_v29 = vadd.f32 %v1307_v52, %v1294_v57 }
 0x48c   :  { %v1354_v25 = vpop.permute.xlu1 %1353 }
 0x48d   :  { %v1331_v36 = vsel %vm756_vm9, %v1329_v59, %v1330_v5  ;;  %v1357_v16 = vrot.slane %v1354_v25, 4 }
 0x48e   :  { %v1342_v11 = vpop.permute.xlu0 %1341  ;;  %v1333_v55 = vsel %vm1332_vm5, %v2337_v6, %v1331_v36 }
 0x48f   :  { %v1344_v45 = vrot.slane %v1342_v11, 4  ;;  %v1335_v12 = vmul.f32 %v1333_v55, %v1324_v15  ;;  %v1322_v11 = vadd.f32 %v1321_v60, %v1308_v29 }
 0x490   :  { %v1368_v22 = vpop.permute.xlu1 %1367 }
 0x491   :  { %v1345_v35 = vsel %vm756_vm9, %v1343_v13, %v1344_v45  ;;  %v1371_v20 = vrot.slane %v1368_v22, 4  ;;  %v1336_v50 = vadd.f32 %v1335_v12, %v1322_v11 }
 0x492   :  { %v1356_v2 = vpop.permute.xlu0 %1355  ;;  %v1347_v46 = vsel %vm1346_vm6, %v2348_v44, %v1345_v35 }
 0x493   :  { %v1358_v54 = vrot.slane %v1356_v2, 4  ;;  %v1349_v48 = vmul.f32 %v1347_v46, %v1338_v10 }
 0x494   :  { %v1382_v47 = vpop.permute.xlu1 %1381 }
 0x495   :  { %v1359_v38 = vsel %vm756_vm9, %v1357_v16, %v1358_v54  ;;  %v1385_v1 = vrot.slane %v1382_v47, 4  ;;  %v1350_v42 = vadd.f32 %v1349_v48, %v1336_v50 }
 0x496   :  { %v1370_v24 = vpop.permute.xlu0 %1369  ;;  %v1361_v58 = vsel %vm1360_vm7, %v1354_v25, %v1359_v38 }
 0x497   :  { %v1372_v61 = vrot.slane %v1370_v24, 4  ;;  %v1363_v21 = vmul.f32 %v1361_v58, %v1352_v49  ;;  %v1744_v49 = vmov 1966171168  }
 0x498   :  { %v1396_v6 = vpop.permute.xlu1 %1395  ;;  %v1437_v58 = vunpack.c.l.s4 %v1744_v49 }
 0x499   :  { %v1373_v41 = vsel %vm756_vm9, %v1371_v20, %v1372_v61  ;;  %v1399_v43 = vrot.slane %v1396_v6, 4  ;;  %v1364_v36 = vadd.f32 %v1363_v21, %v1350_v42  ;;  %v1427_v61 = vstv %s1531_s5 }
 0x49a   :  { %v1384_v7 = vpop.permute.xlu0 %1383  ;;  %v1375_v5 = vsel %vm1374_vm8, %v1368_v22, %v1373_v41 }
 0x49b   :  { %v1386_v40 = vrot.slane %v1384_v7, 4  ;;  %v1377_v62 = vmul.f32 %v1375_v5, %v1366_v17  ;;  %v1438_v7 = vunpack.c.0.s8 %v1437_v58 }
 0x49c   :  { %v1410_v2 = vpop.permute.xlu1 %1409 }
 0x49d   :  { %v1387_v44 = vsel %vm756_vm9, %v1385_v1, %v1386_v40  ;;  %v1378_v53 = vadd.f32 %v1377_v62, %v1364_v36  ;;  %v1413_v35 = vrot.slane %v1410_v2, 4 }
 0x49e   :  { %v1389_v59 = vsel %vm1388_vm10, %v1382_v47, %v1387_v44  ;;  %v1398_v45 = vpop.permute.xlu0 %1397  ;;  %v1408_v47 = vld [vmem:[#allocation7 + $0x180] sm:$0xff] }
 0x49f   :  { %v1400_v25 = vrot.slane %v1398_v45, 4  ;;  %v1391_v13 = vmul.f32 %v1389_v59, %v1380_v51 }
 0x4a1   :  { %v1401_v54 = vsel %vm756_vm9, %v1399_v43, %v1400_v25  ;;  %v1392_v16 = vadd.f32 %v1391_v13, %v1378_v53 }
 0x4a2   :  { %v1403_v23 = vsel %vm1402_vm11, %v1396_v6, %v1401_v54  ;;  %v1412_v22 = vpop.permute.xlu0 %1411  ;;  %v1441_v6 = vsub.s32 %v1438_v7, %v1876_v33 }
 0x4a3   :  { %v1405_v14 = vmul.f32 %v1403_v23, %v1394_v39  ;;  %v1414_v52 = vrot.slane %v1412_v22, 4 }
 0x4a5   :  { %v1415_v57 = vsel %vm756_vm9, %v1413_v35, %v1414_v52  ;;  %v1406_v55 = vadd.f32 %v1405_v14, %v1392_v16 }
 0x4a6   :  { %v1417_v15 = vsel %vm1416_vm12, %v1410_v2, %v1415_v57 }
 0x4a7   :  { %v1419_v24 = vmul.f32 %v1417_v15, %v1408_v47 }
 0x4a9   :  { %v1420_v60 = vadd.f32 %v1419_v24, %v1406_v55 }
 0x4ab   :  { %v1530_v38 = vrot.slane %v1420_v60, 10 }
 0x4ad   :  { %v1425_v20 = vadd.f32 %v1530_v38, %v1420_v60 }
 0x4af   :  { %v1428_v10 = vadd.f32 %v1427_v61, %v1425_v20 }
 0x4b1   :  { %v1429_v46 = vsub.f32 0.0, %v1428_v10 }
 0x4b3   :  { %v1430_v29 = vmul.f32 1.442695, %v1429_v46 }
 0x4b5   :  { %1597 = vpow2.f32 %v1430_v29 }
 0x4bf   :  { %v1598_v12 = vpop.eup %1597 }
 0x4c0   :  { %v1432_v41 = vadd.f32 1.0, %v1598_v12 }
 0x4c2   :  { %1599 = vrcp.f32 %v1432_v41 }
 0x4cc   :  { %v1600_v11 = vpop.eup %1599 }
 0x4cd   :  { %v1442_v48 = vrot.slane %v1600_v11, %v1441_v6 }
 0x4cf   :  { %v1443_v40 = vcombine.high %v1442_v48, %v1442_v48  ;;  %v1450_v1 = vrot.slane %v1442_v48, %v1441_v6 }
 0x4d1   :  { %v1457_v17 = vrot.slane %v1443_v40, %v1441_v6  ;;  %v1461_v5 = vrot.slane %v1450_v1, %v1879_v34  ;;  %v1465_v50 = vrot.slane %v1450_v1, %v1886_v37 }
 0x4d3   :  { %v1469_v21 = vrot.slane %v1457_v17, %v1879_v34  ;;  %v1473_v44 = vrot.slane %v1457_v17, %v1886_v37  ;;  %v1478_v51 = vmul.f32 %v1461_v5, %v2016_v8  ;;  %v1479_v59 = vmul.f32 %v1465_v50, %v2019_v9 }
 0x4d4   :  { %v1480_v45 = vmul.f32 %v1461_v5, %v1998_v56  ;;  %v1481_v33 = vmul.f32 %v1465_v50, %v2001_v32  ;;  %v1482_v42 = vmul.f32 %v1461_v5, %v2050_v18  ;;  %v1483_v62 = vmul.f32 %v1465_v50, %v2053_v19 }
 0x4d5   :  { %v1484_v25 = vmul.f32 %v1461_v5, %v2068_v63  ;;  %v1485_v34 = vmul.f32 %v1465_v50, %v2071_v3  ;;  %v1486_v37 = vmul.f32 %v1469_v21, %v2004_v27  ;;  %v1487_v8 = vmul.f32 %v1473_v44, %v2007_v28  ;;  %1494 = vst [vmem:[#allocation10] sm:$0xff] %v1478_v51  ;;  %v2421_v63 = vld [vmem:[#allocation15_spill] sm:$0xff] }
 0x4d6   :  { %1495 = vst [vmem:[#allocation10 + $0x8] sm:$0xff] %v1479_v59  ;;  %v1488_v56 = vmul.f32 %v1469_v21, %v2010_v30  ;;  %v1489_v32 = vmul.f32 %v1473_v44, %v2013_v26  ;;  %v1490_v9 = vmul.f32 %v1469_v21, %v2022_v31  ;;  %v1491_v18 = vmul.f32 %v1473_v44, %v2025_v0 }
 0x4d7   :  { %1496 = vst [vmem:[#allocation10 + $0x10] sm:$0xff] %v1480_v45  ;;  %1497 = vst [vmem:[#allocation10 + $0x18] sm:$0xff] %v1481_v33  ;;  %v1492_v19 = vmul.f32 %v1469_v21, %v2036_v4  ;;  %v1493_v27 = vmul.f32 %v1473_v44, %v2421_v63 }
 0x4d8   :  { %1498 = vst [vmem:[#allocation10 + $0x20] sm:$0xff] %v1482_v42  ;;  %1499 = vst [vmem:[#allocation10 + $0x28] sm:$0xff] %v1483_v62 }
 0x4d9   :  { %1500 = vst [vmem:[#allocation10 + $0x30] sm:$0xff] %v1484_v25  ;;  %1501 = vst [vmem:[#allocation10 + $0x38] sm:$0xff] %v1485_v34 }
 0x4da   :  { %1502 = vst [vmem:[#allocation10 + $0x40] sm:$0xff] %v1486_v37  ;;  %1503 = vst [vmem:[#allocation10 + $0x48] sm:$0xff] %v1487_v8 }
 0x4db   :  { %1504 = vst [vmem:[#allocation10 + $0x50] sm:$0xff] %v1488_v56  ;;  %1505 = vst [vmem:[#allocation10 + $0x58] sm:$0xff] %v1489_v32 }
 0x4dc   :  { %1506 = vst [vmem:[#allocation10 + $0x60] sm:$0xff] %v1490_v9  ;;  %1507 = vst [vmem:[#allocation10 + $0x68] sm:$0xff] %v1491_v18 }
 0x4dd   :  { %1508 = vst [vmem:[#allocation10 + $0x70] sm:$0xff] %v1492_v19  ;;  %1509 = vst [vmem:[#allocation10 + $0x78] sm:$0xff] %v1493_v27 }
 0x4de   :  { %1668 = shalt.err (!%p1665_p11)
}
 0x4df   :  { %s1669_s11 = scalar_lea.hbm %s2418_s6, 2048 }
 0x4e0   :  { %p1670_p12 = scmp.ne.s32.totalorder %s2418_s6, %s1669_s11  ;;  %p1673_p13 = scmp.lt.u32.totalorder %s1669_s11, %s2418_s6 }
 0x4e2   :  { %p1675_p0 = pnand %p1673_p13, %p1670_p12 }
 0x4e4   :  { %1678 = shalt.err (!%p1675_p0)
}
 0x4e5   :  { %1521 = dma.vmem_to_hbm [thread:$0]  %s1516_s29, 2048, %s2418_s6, [#allocation5], %s1688_s7, %s1688_s7, %s1689_s8  }
 0x4e6   :  { %1685 = dma.done.wait [#allocation5], 2048  }
 0x4e7   :  { %1686 = vsyncadd [#allocation5], 4294965248 }
 0x4e8   :  { %1525 = vsyncpa [#allocation4], 1 }
 0x4e9   :  { %1526 = vsyncpa [#allocation8], 1 }
 0x4ea   :  { %1527 = vsyncpa [#allocation5], 1 }
 0x4eb   :  { %1528 = vsyncpa [#allocation6], 1 }

</bundles_post_ra>
